<compile_context>
chip_gen: v6e
topology: v6e:2x2x1
jax: 0.10.0
libtpu: 0.0.40
codegen_flags: <defaults>
</compile_context>

<pallas_src>
import jax
import jax.numpy as jnp
import numpy as np
from jax.experimental import pallas as pl
from jax.experimental.pallas import tpu as pltpu

# --- synthetic config (stands in for weight_prediction_config) ---
BASE_EMB_DIM = 32
EMB_DIM = {'rearer_dk': 16, 'tech_bk': 24}
HIDDEN_DIMS = [512, 128, 64, 32, 8]
MLP_OUT = 3
BN_EPS = 1e-5

VOCAB = {
    'l3_breeds_class_nm': 5,
    'feed_breeds_nm': 7,
    'gender': 2,
    'breeds_class_nm': 4,
    'rearer_dk': 10,
    'org_inv_dk': 6,
    'l3_org_inv_nm': 3,
    'l4_org_inv_nm': 4,
    'tech_bk': 9,
}
FIELD_ORDER = list(VOCAB.keys())
NUM_FIELDS = len(FIELD_ORDER)
TOTAL_VOCAB = sum(VOCAB[n] for n in FIELD_ORDER)          # 50
VOCAB_OFFSETS = np.cumsum([0] + [VOCAB[n] for n in FIELD_ORDER[:-1]]).astype(np.int32)

# Static [50, 9] field-selection matrix: SEL[r, f] = 1 iff vocab row r belongs to field f.
SEL_MATRIX = np.zeros((TOTAL_VOCAB, NUM_FIELDS), np.float32)
for _f, _name in enumerate(FIELD_ORDER):
    SEL_MATRIX[VOCAB_OFFSETS[_f]:VOCAB_OFFSETS[_f] + VOCAB[_name], _f] = 1.0

# Batch tile cap: 2048 keeps per-step VMEM ~10 MB (fits v5e 16 MiB scoped w/ raised
# limit, v6e/v7x 32 MiB scoped).  On v6e with very large batches this can be raised to
# 4096; keep 2048 on v7x (64 MiB physical / 2 TCs).
TB_MAX = 2048


def _round_up(x, m):
    return ((x + m - 1) // m) * m


def _choose_tb(batch, tb_max=TB_MAX):
    """Lane-dense batch tile, aiming for >= 2 grid steps so the 'parallel' axis can
    split across both TensorCores on v7x."""
    b = max(int(batch), 1)
    tb = _round_up(-(-b // 2), 128)     # round_up(ceil(B/2), 128)
    tb = min(tb, tb_max)
    return max(tb, 128)


# ----------------------------- Pallas kernel -----------------------------
def _softplus(z):
    # numerically-stable softplus: log(1 + exp(z))  (avoid log1p for lowering safety)
    return jnp.maximum(z, 0.0) + jnp.log(1.0 + jnp.exp(-jnp.abs(z)))


def nfm_kernel(idx_ref, age_ref, sel_ref, tab2_ref,
               w1_ref, b1_ref, w2_ref, b2_ref, w3_ref, b3_ref,
               w4_ref, b4_ref, w5_ref, b5_ref, w6_ref, b6_ref,
               y_ref):
    tb = idx_ref.shape[1]                            # static batch-tile width

    # ---- multi-hot build: one tiny matmul + ONE compare (instead of 9 passes) ----
    # idx is bf16 but holds exact small integers (global vocab ids < 64).
    expected = jnp.dot(sel_ref[...], idx_ref[...],
                       preferred_element_type=jnp.float32)          # [50, TB]
    iota = jax.lax.broadcasted_iota(jnp.int32, (TOTAL_VOCAB, tb), 0).astype(jnp.float32)
    m = jnp.where(iota == expected, 1.0, 0.0).astype(jnp.bfloat16)   # [50, TB] one-hot

    # ---- fused embedding gather: single dot yields sum_f e_f and sum_f e_f^2 ----
    g = jnp.dot(tab2_ref[...], m, preferred_element_type=jnp.float32)  # [2E, TB]
    s = g[:BASE_EMB_DIM, :]                          # sum_f e_f       [E, TB]
    sq = g[BASE_EMB_DIM:, :]                         # sum_f e_f^2     [E, TB]

    # FeatureInteraction + BatchNorm: 0.5 factor and BN scale/shift are folded into
    # layer-1 weights/bias on the host, so just u = s^2 - sq here.
    u = s * s - sq                                   # [E, TB] f32

    # MLP (batch-last): weights stored [dout, din] bf16; f32 accumulation + f32 ReLU.
    def dense(h, w_ref, b_ref, relu):
        h = jnp.dot(w_ref[...], h.astype(jnp.bfloat16),
                    preferred_element_type=jnp.float32) + b_ref[...]
        return jnp.maximum(h, 0.0) if relu else h

    x = dense(u, w1_ref, b1_ref, True)               # [512, TB]
    x = dense(x, w2_ref, b2_ref, True)               # [128, TB]
    x = dense(x, w3_ref, b3_ref, True)               # [64,  TB]
    x = dense(x, w4_ref, b4_ref, True)               # [32,  TB]
    x = dense(x, w5_ref, b5_ref, True)               # [8,   TB]
    x = dense(x, w6_ref, b6_ref, False)              # [3,   TB]

    a = _softplus(x[0:1, :])                         # [1, TB]
    b = _softplus(x[1:2, :])                         # [1, TB]
    c = x[2:3, :]                                    # [1, TB]
    age = age_ref[...]                               # [1, TB]

    z = a * age + c
    y_ref[...] = b * pl.reciprocal(1.0 + jnp.exp(-z), approx=True)   # b * sigmoid(z)


# ----------------------------- parameter init -----------------------------
def init_params(key):
    params = {'emb': {}}
    n_keys = len(FIELD_ORDER) + 2 * 2 + 4 + 2 * 6
    keys = list(jax.random.split(key, n_keys))
    ki = iter(range(n_keys))

    def nxt():
        return keys[next(ki)]

    # embedding tables
    for name in FIELD_ORDER:
        dim = EMB_DIM.get(name, BASE_EMB_DIM)
        params['emb'][name] = 0.5 * jax.random.normal(
            nxt(), (VOCAB[name], dim), dtype=jnp.float32)

    # rearer_dk_fc, tech_bk_fc  (stored as [in, out])
    params['rearer_dk_fc_w'] = jax.random.normal(
        nxt(), (EMB_DIM['rearer_dk'], BASE_EMB_DIM), jnp.float32) / np.sqrt(EMB_DIM['rearer_dk'])
    params['rearer_dk_fc_b'] = 0.1 * jax.random.normal(nxt(), (BASE_EMB_DIM,), jnp.float32)
    params['tech_bk_fc_w'] = jax.random.normal(
        nxt(), (EMB_DIM['tech_bk'], BASE_EMB_DIM), jnp.float32) / np.sqrt(EMB_DIM['tech_bk'])
    params['tech_bk_fc_b'] = 0.1 * jax.random.normal(nxt(), (BASE_EMB_DIM,), jnp.float32)

    # BatchNorm1d(BASE_EMB_DIM) -- inference-mode parameters, shaped [1, E]
    params['bn_gamma'] = 1.0 + 0.05 * jax.random.normal(nxt(), (1, BASE_EMB_DIM), jnp.float32)
    params['bn_beta'] = 0.05 * jax.random.normal(nxt(), (1, BASE_EMB_DIM), jnp.float32)
    params['bn_mean'] = 0.05 * jax.random.normal(nxt(), (1, BASE_EMB_DIM), jnp.float32)
    params['bn_var'] = 1.0 + jnp.abs(0.1 * jax.random.normal(nxt(), (1, BASE_EMB_DIM), jnp.float32))

    # MLP: BASE_EMB_DIM -> 512 -> 128 -> 64 -> 32 -> 8 -> 3  (stored [in, out] / [1, out])
    dims = [BASE_EMB_DIM] + HIDDEN_DIMS + [MLP_OUT]
    mlp_w, mlp_b = [], []
    for din, dout in zip(dims[:-1], dims[1:]):
        mlp_w.append(jax.random.normal(nxt(), (din, dout), jnp.float32) / np.sqrt(din))
        mlp_b.append(0.1 * jax.random.normal(nxt(), (1, dout), jnp.float32))
    params['mlp_w'] = mlp_w
    params['mlp_b'] = mlp_b
    return params


# ----------------------------- host-side weight prep -----------------------------
def _prepare_kernel_params(params):
    """Fold the two tiny FCs into their embedding tables, concatenate table and
    squared table into one [2E, 50] bf16 matrix, fold (0.5 * BatchNorm) into layer-1
    weights/bias, and pre-transpose MLP weights to [dout, din] bf16."""
    tabs = []
    for name in FIELD_ORDER:
        t = params['emb'][name]
        if name == 'rearer_dk':
            t = t @ params['rearer_dk_fc_w'] + params['rearer_dk_fc_b']
        elif name == 'tech_bk':
            t = t @ params['tech_bk_fc_w'] + params['tech_bk_fc_b']
        tabs.append(t)
    table = jnp.concatenate(tabs, axis=0)                            # [50, E] f32
    tab2 = jnp.concatenate([table.T, (table * table).T], axis=0)      # [2E, 50]
    tab2 = tab2.astype(jnp.bfloat16)

    # BN folded as scale/shift (inference: running stats)
    scale = (params['bn_gamma'] * jax.lax.rsqrt(params['bn_var'] + BN_EPS)).reshape(-1)   # [E]
    shift = (params['bn_beta'] - params['bn_mean'] * scale).reshape(-1)                   # [E]

    mlp_wt = [w.T for w in params['mlp_w']]          # [dout, din] f32
    mlp_bc = [b.T for b in params['mlp_b']]          # [dout, 1]  f32

    # layer-1 fold:  h1 = W1t @ (0.5*scale ⊙ u) + (W1t @ shift + b1),  u = s^2 - sq
    w1t = mlp_wt[0]                                  # [512, E]
    mlp_bc[0] = mlp_bc[0] + w1t @ shift.reshape(-1, 1)
    mlp_wt[0] = w1t * (0.5 * scale)[None, :]

    mlp_wt = [w.astype(jnp.bfloat16) for w in mlp_wt]   # MXU operands bf16
    return tab2, mlp_wt, mlp_bc                         # biases stay f32


# ----------------------------- wrapper -----------------------------
def weight_prediction_nfm_pallas(params, x_input, tb_max=TB_MAX):
    B = x_input.shape[0]
    tb = _choose_tb(B, tb_max)
    b_pad = _round_up(B, tb)
    n_tiles = b_pad // tb

    tab2, mlp_wt, mlp_bc = _prepare_kernel_params(params)
    sel = jnp.asarray(SEL_MATRIX, dtype=jnp.bfloat16)                 # [50, 9]

    # global (offset) categorical indices, batch-last, padded; values < 64 so the
    # bf16 cast is exact.
    offs = jnp.asarray(VOCAB_OFFSETS)                                  # [9]
    idx = x_input[:, :NUM_FIELDS].astype(jnp.int32) + offs[None, :]    # [B, 9]
    idx_t = jnp.pad(idx.T, ((0, 0), (0, b_pad - B))).astype(jnp.bfloat16)   # [9, B_pad]
    age = jnp.pad(x_input[:, 9], (0, b_pad - B)).reshape(1, b_pad).astype(jnp.float32)

    args = [idx_t, age, sel, tab2]
    for w, b in zip(mlp_wt, mlp_bc):
        args.append(w)
        args.append(b)

    def batch_spec(rows):
        return pl.BlockSpec((rows, tb), lambda i: (0, i))

    def resident_spec(arr):
        return pl.BlockSpec(arr.shape, lambda i: (0, 0))

    in_specs = [batch_spec(NUM_FIELDS), batch_spec(1)]
    in_specs += [resident_spec(a) for a in args[2:]]

    # advisory cost estimate so XLA schedules surrounding pad/transpose ops sensibly
    mlp_dims = [BASE_EMB_DIM] + HIDDEN_DIMS + [MLP_OUT]
    mlp_flops = sum(2 * di * do for di, do in zip(mlp_dims[:-1], mlp_dims[1:]))
    flops_per_sample = (2 * TOTAL_VOCAB * NUM_FIELDS            # selection matmul
                        + 2 * (2 * BASE_EMB_DIM) * TOTAL_VOCAB  # fused gather matmul
                        + mlp_flops)
    weight_bytes = sum(int(np.prod(a.shape)) * a.dtype.itemsize for a in args[2:])
    cost = pl.CostEstimate(
        flops=int(flops_per_sample * b_pad),
        transcendentals=int(5 * b_pad),
        bytes_accessed=int(b_pad * (NUM_FIELDS * 2 + 4 + 4) + weight_bytes))

    y = pl.pallas_call(
        nfm_kernel,
        out_shape=jax.ShapeDtypeStruct((1, b_pad), jnp.float32),
        grid=(n_tiles,),
        in_specs=in_specs,
        out_specs=pl.BlockSpec((1, tb), lambda i: (0, i)),
        compiler_params=pltpu.CompilerParams(
            dimension_semantics=("parallel",),
            vmem_limit_bytes=32 * 1024 * 1024),
        cost_estimate=cost,
    )(*args)
    return y[0, :B]                                   # [B]


# ----------------------------- pure-JAX reference (f32) -----------------------------
def gather_embeddings(params, x_input):
    idx = x_input[:, :9].astype(jnp.int32)
    embs = []
    for j, name in enumerate(FIELD_ORDER):
        e = params['emb'][name][idx[:, j]]            # [B, dim]
        if name == 'rearer_dk':
            e = e @ params['rearer_dk_fc_w'] + params['rearer_dk_fc_b']
        elif name == 'tech_bk':
            e = e @ params['tech_bk_fc_w'] + params['tech_bk_fc_b']
        embs.append(e)
    return jnp.stack(embs, axis=0)                    # [F=9, B, E]


def weight_prediction_nfm_ref(params, x_input):
    emb_stk = gather_embeddings(params, x_input)      # [9, B, E]
    age = x_input[:, 9]
    s = jnp.sum(emb_stk, axis=0)
    sq = jnp.sum(emb_stk ** 2, axis=0)
    x = 0.5 * (s ** 2 - sq)
    x = (x - params['bn_mean']) / jnp.sqrt(params['bn_var'] + BN_EPS)
    x = x * params['bn_gamma'] + params['bn_beta']
    n = len(params['mlp_w'])
    for i, (w, b) in enumerate(zip(params['mlp_w'], params['mlp_b'])):
        x = x @ w + b
        if i < n - 1:
            x = jnp.maximum(x, 0.0)
    a = jax.nn.softplus(x[:, 0])
    b = jax.nn.softplus(x[:, 1])
    c = x[:, 2]
    return b * jax.nn.sigmoid(a * age + c)


# ----------------------------- main -----------------------------
if __name__ == "__main__":
    key = jax.random.PRNGKey(0)
    k_param, k_idx, k_age = jax.random.split(key, 3)

    params = init_params(k_param)

    B = 8
    # build the [B, 10] float input: 9 categorical index columns + age
    idx_cols = []
    idx_keys = jax.random.split(k_idx, len(FIELD_ORDER))
    for kk, name in zip(idx_keys, FIELD_ORDER):
        idx_cols.append(jax.random.randint(kk, (B,), 0, VOCAB[name]).astype(jnp.float32))
    age = 10.0 * jax.random.uniform(k_age, (B,), jnp.float32)
    x_input = jnp.stack(idx_cols + [age], axis=1)     # [B, 10]

    y_pallas = jax.block_until_ready(weight_prediction_nfm_pallas(params, x_input))
    y_ref = jax.block_until_ready(weight_prediction_nfm_ref(params, x_input))

    # bf16 MXU operands => relaxed tolerance vs the f32 reference.
    np.testing.assert_allclose(np.asarray(y_pallas), np.asarray(y_ref),
                               rtol=5e-2, atol=2e-2)
    assert not bool(jnp.any(jnp.isnan(y_pallas)))
    print("KERNEL_OK")
</pallas_src>

<mosaic_0001>
module attributes {stable_mosaic.version = 11 : i64} {
  func.func @nfm_kernel(%arg0: i32, %arg1: memref<9x128xbf16, #tpu.memory_space<vmem>>, %arg2: memref<1x128xf32, #tpu.memory_space<vmem>>, %arg3: memref<50x9xbf16, #tpu.memory_space<vmem>>, %arg4: memref<64x50xbf16, #tpu.memory_space<vmem>>, %arg5: memref<512x32xbf16, #tpu.memory_space<vmem>>, %arg6: memref<512x1xf32, #tpu.memory_space<vmem>>, %arg7: memref<128x512xbf16, #tpu.memory_space<vmem>>, %arg8: memref<128x1xf32, #tpu.memory_space<vmem>>, %arg9: memref<64x128xbf16, #tpu.memory_space<vmem>>, %arg10: memref<64x1xf32, #tpu.memory_space<vmem>>, %arg11: memref<32x64xbf16, #tpu.memory_space<vmem>>, %arg12: memref<32x1xf32, #tpu.memory_space<vmem>>, %arg13: memref<8x32xbf16, #tpu.memory_space<vmem>>, %arg14: memref<8x1xf32, #tpu.memory_space<vmem>>, %arg15: memref<3x8xbf16, #tpu.memory_space<vmem>>, %arg16: memref<3x1xf32, #tpu.memory_space<vmem>>, %arg17: memref<1x128xf32, #tpu.memory_space<vmem>>) attributes {dimension_semantics = [#tpu.dimension_semantics<parallel>], iteration_bounds = array<i64: 1>, scalar_prefetch = 0 : i64, scratch_operands = 0 : i64, tpu.core_type = #tpu.core_type<tc>, window_params = [{transform_indices = @transform_0, window_bounds = array<i64: 9, 128>}, {transform_indices = @transform_1, window_bounds = array<i64: 1, 128>}, {pipeline_mode = #tpu.pipeline_mode<synchronous>, transform_indices = @transform_2, window_bounds = array<i64: 50, 9>}, {pipeline_mode = #tpu.pipeline_mode<synchronous>, transform_indices = @transform_3, window_bounds = array<i64: 64, 50>}, {pipeline_mode = #tpu.pipeline_mode<synchronous>, transform_indices = @transform_4, window_bounds = array<i64: 512, 32>}, {pipeline_mode = #tpu.pipeline_mode<synchronous>, transform_indices = @transform_5, window_bounds = array<i64: 512, 1>}, {pipeline_mode = #tpu.pipeline_mode<synchronous>, transform_indices = @transform_6, window_bounds = array<i64: 128, 512>}, {pipeline_mode = #tpu.pipeline_mode<synchronous>, transform_indices = @transform_7, window_bounds = array<i64: 128, 1>}, {pipeline_mode = #tpu.pipeline_mode<synchronous>, transform_indices = @transform_8, window_bounds = array<i64: 64, 128>}, {pipeline_mode = #tpu.pipeline_mode<synchronous>, transform_indices = @transform_9, window_bounds = array<i64: 64, 1>}, {pipeline_mode = #tpu.pipeline_mode<synchronous>, transform_indices = @transform_10, window_bounds = array<i64: 32, 64>}, {pipeline_mode = #tpu.pipeline_mode<synchronous>, transform_indices = @transform_11, window_bounds = array<i64: 32, 1>}, {pipeline_mode = #tpu.pipeline_mode<synchronous>, transform_indices = @transform_12, window_bounds = array<i64: 8, 32>}, {pipeline_mode = #tpu.pipeline_mode<synchronous>, transform_indices = @transform_13, window_bounds = array<i64: 8, 1>}, {pipeline_mode = #tpu.pipeline_mode<synchronous>, transform_indices = @transform_14, window_bounds = array<i64: 3, 8>}, {pipeline_mode = #tpu.pipeline_mode<synchronous>, transform_indices = @transform_15, window_bounds = array<i64: 3, 1>}, {transform_indices = @transform_16, window_bounds = array<i64: 1, 128>}]} {
    %c0 = arith.constant 0 : index
    %c0_0 = arith.constant 0 : index
    %0 = vector.load %arg3[%c0, %c0_0] : memref<50x9xbf16, #tpu.memory_space<vmem>>, vector<50x9xbf16>
    %c0_1 = arith.constant 0 : index
    %c0_2 = arith.constant 0 : index
    %1 = vector.load %arg1[%c0_1, %c0_2] : memref<9x128xbf16, #tpu.memory_space<vmem>>, vector<9x128xbf16>
    %cst = arith.constant dense<0.000000e+00> : vector<50x128xf32>
    %2 = tpu.matmul %0, %1, %cst {dimension_numbers = #tpu.dot_dimension_numbers<[1], [0], [0], [1], [0, 0, 1, 1], [], []>} : vector<50x9xbf16>, vector<9x128xbf16>, vector<50x128xf32> -> vector<50x128xf32>
    %3 = tpu.iota {dimensions = array<i32: 0>} : vector<50x128xi32>
    %4 = arith.sitofp %3 : vector<50x128xi32> to vector<50x128xf32>
    %5 = arith.cmpf oeq, %4, %2 : vector<50x128xf32>
    %cst_3 = arith.constant 1.000000e+00 : f32
    %cst_4 = arith.constant 0.000000e+00 : f32
    %6 = vector.broadcast %cst_3 : f32 to vector<50x128xf32>
    %7 = vector.broadcast %cst_4 : f32 to vector<50x128xf32>
    %8 = arith.select %5, %6, %7 : vector<50x128xi1>, vector<50x128xf32>
    %9 = arith.truncf %8 : vector<50x128xf32> to vector<50x128xbf16>
    %c0_5 = arith.constant 0 : index
    %c0_6 = arith.constant 0 : index
    %10 = vector.load %arg4[%c0_5, %c0_6] : memref<64x50xbf16, #tpu.memory_space<vmem>>, vector<64x50xbf16>
    %cst_7 = arith.constant dense<0.000000e+00> : vector<64x128xf32>
    %11 = tpu.matmul %10, %9, %cst_7 {dimension_numbers = #tpu.dot_dimension_numbers<[1], [0], [0], [1], [0, 0, 1, 1], [], []>} : vector<64x50xbf16>, vector<50x128xbf16>, vector<64x128xf32> -> vector<64x128xf32>
    %12 = vector.extract_strided_slice %11 {offsets = [0, 0], sizes = [32, 128], strides = [1, 1]} : vector<64x128xf32> to vector<32x128xf32>
    %13 = vector.extract_strided_slice %11 {offsets = [32, 0], sizes = [32, 128], strides = [1, 1]} : vector<64x128xf32> to vector<32x128xf32>
    %14 = arith.mulf %12, %12 : vector<32x128xf32>
    %15 = arith.subf %14, %13 : vector<32x128xf32>
    %c0_8 = arith.constant 0 : index
    %c0_9 = arith.constant 0 : index
    %16 = vector.load %arg5[%c0_8, %c0_9] : memref<512x32xbf16, #tpu.memory_space<vmem>>, vector<512x32xbf16>
    %17 = arith.truncf %15 : vector<32x128xf32> to vector<32x128xbf16>
    %cst_10 = arith.constant dense<0.000000e+00> : vector<512x128xf32>
    %18 = tpu.matmul %16, %17, %cst_10 {dimension_numbers = #tpu.dot_dimension_numbers<[1], [0], [0], [1], [0, 0, 1, 1], [], []>} : vector<512x32xbf16>, vector<32x128xbf16>, vector<512x128xf32> -> vector<512x128xf32>
    %c0_11 = arith.constant 0 : index
    %c0_12 = arith.constant 0 : index
    %19 = vector.load %arg6[%c0_11, %c0_12] : memref<512x1xf32, #tpu.memory_space<vmem>>, vector<512x1xf32>
    %20 = vector.broadcast %19 : vector<512x1xf32> to vector<512x128xf32>
    %21 = arith.addf %18, %20 : vector<512x128xf32>
    %cst_13 = arith.constant 0.000000e+00 : f32
    %22 = vector.broadcast %cst_13 : f32 to vector<512x128xf32>
    %23 = arith.maximumf %21, %22 : vector<512x128xf32>
    %c0_14 = arith.constant 0 : index
    %c0_15 = arith.constant 0 : index
    %24 = vector.load %arg7[%c0_14, %c0_15] : memref<128x512xbf16, #tpu.memory_space<vmem>>, vector<128x512xbf16>
    %25 = arith.truncf %23 : vector<512x128xf32> to vector<512x128xbf16>
    %cst_16 = arith.constant dense<0.000000e+00> : vector<128x128xf32>
    %26 = tpu.matmul %24, %25, %cst_16 {dimension_numbers = #tpu.dot_dimension_numbers<[1], [0], [0], [1], [0, 0, 1, 1], [], []>} : vector<128x512xbf16>, vector<512x128xbf16>, vector<128x128xf32> -> vector<128x128xf32>
    %c0_17 = arith.constant 0 : index
    %c0_18 = arith.constant 0 : index
    %27 = vector.load %arg8[%c0_17, %c0_18] : memref<128x1xf32, #tpu.memory_space<vmem>>, vector<128x1xf32>
    %28 = vector.broadcast %27 : vector<128x1xf32> to vector<128x128xf32>
    %29 = arith.addf %26, %28 : vector<128x128xf32>
    %cst_19 = arith.constant 0.000000e+00 : f32
    %30 = vector.broadcast %cst_19 : f32 to vector<128x128xf32>
    %31 = arith.maximumf %29, %30 : vector<128x128xf32>
    %c0_20 = arith.constant 0 : index
    %c0_21 = arith.constant 0 : index
    %32 = vector.load %arg9[%c0_20, %c0_21] : memref<64x128xbf16, #tpu.memory_space<vmem>>, vector<64x128xbf16>
    %33 = arith.truncf %31 : vector<128x128xf32> to vector<128x128xbf16>
    %cst_22 = arith.constant dense<0.000000e+00> : vector<64x128xf32>
    %34 = tpu.matmul %32, %33, %cst_22 {dimension_numbers = #tpu.dot_dimension_numbers<[1], [0], [0], [1], [0, 0, 1, 1], [], []>} : vector<64x128xbf16>, vector<128x128xbf16>, vector<64x128xf32> -> vector<64x128xf32>
    %c0_23 = arith.constant 0 : index
    %c0_24 = arith.constant 0 : index
    %35 = vector.load %arg10[%c0_23, %c0_24] : memref<64x1xf32, #tpu.memory_space<vmem>>, vector<64x1xf32>
    %36 = vector.broadcast %35 : vector<64x1xf32> to vector<64x128xf32>
    %37 = arith.addf %34, %36 : vector<64x128xf32>
    %cst_25 = arith.constant 0.000000e+00 : f32
    %38 = vector.broadcast %cst_25 : f32 to vector<64x128xf32>
    %39 = arith.maximumf %37, %38 : vector<64x128xf32>
    %c0_26 = arith.constant 0 : index
    %c0_27 = arith.constant 0 : index
    %40 = vector.load %arg11[%c0_26, %c0_27] : memref<32x64xbf16, #tpu.memory_space<vmem>>, vector<32x64xbf16>
    %41 = arith.truncf %39 : vector<64x128xf32> to vector<64x128xbf16>
    %cst_28 = arith.constant dense<0.000000e+00> : vector<32x128xf32>
    %42 = tpu.matmul %40, %41, %cst_28 {dimension_numbers = #tpu.dot_dimension_numbers<[1], [0], [0], [1], [0, 0, 1, 1], [], []>} : vector<32x64xbf16>, vector<64x128xbf16>, vector<32x128xf32> -> vector<32x128xf32>
    %c0_29 = arith.constant 0 : index
    %c0_30 = arith.constant 0 : index
    %43 = vector.load %arg12[%c0_29, %c0_30] : memref<32x1xf32, #tpu.memory_space<vmem>>, vector<32x1xf32>
    %44 = vector.broadcast %43 : vector<32x1xf32> to vector<32x128xf32>
    %45 = arith.addf %42, %44 : vector<32x128xf32>
    %cst_31 = arith.constant 0.000000e+00 : f32
    %46 = vector.broadcast %cst_31 : f32 to vector<32x128xf32>
    %47 = arith.maximumf %45, %46 : vector<32x128xf32>
    %c0_32 = arith.constant 0 : index
    %c0_33 = arith.constant 0 : index
    %48 = vector.load %arg13[%c0_32, %c0_33] : memref<8x32xbf16, #tpu.memory_space<vmem>>, vector<8x32xbf16>
    %49 = arith.truncf %47 : vector<32x128xf32> to vector<32x128xbf16>
    %cst_34 = arith.constant dense<0.000000e+00> : vector<8x128xf32>
    %50 = tpu.matmul %48, %49, %cst_34 {dimension_numbers = #tpu.dot_dimension_numbers<[1], [0], [0], [1], [0, 0, 1, 1], [], []>} : vector<8x32xbf16>, vector<32x128xbf16>, vector<8x128xf32> -> vector<8x128xf32>
    %c0_35 = arith.constant 0 : index
    %c0_36 = arith.constant 0 : index
    %51 = vector.load %arg14[%c0_35, %c0_36] : memref<8x1xf32, #tpu.memory_space<vmem>>, vector<8x1xf32>
    %52 = vector.broadcast %51 : vector<8x1xf32> to vector<8x128xf32>
    %53 = arith.addf %50, %52 : vector<8x128xf32>
    %cst_37 = arith.constant 0.000000e+00 : f32
    %54 = vector.broadcast %cst_37 : f32 to vector<8x128xf32>
    %55 = arith.maximumf %53, %54 : vector<8x128xf32>
    %c0_38 = arith.constant 0 : index
    %c0_39 = arith.constant 0 : index
    %56 = vector.load %arg15[%c0_38, %c0_39] : memref<3x8xbf16, #tpu.memory_space<vmem>>, vector<3x8xbf16>
    %57 = arith.truncf %55 : vector<8x128xf32> to vector<8x128xbf16>
    %cst_40 = arith.constant dense<0.000000e+00> : vector<3x128xf32>
    %58 = tpu.matmul %56, %57, %cst_40 {dimension_numbers = #tpu.dot_dimension_numbers<[1], [0], [0], [1], [0, 0, 1, 1], [], []>} : vector<3x8xbf16>, vector<8x128xbf16>, vector<3x128xf32> -> vector<3x128xf32>
    %c0_41 = arith.constant 0 : index
    %c0_42 = arith.constant 0 : index
    %59 = vector.load %arg16[%c0_41, %c0_42] : memref<3x1xf32, #tpu.memory_space<vmem>>, vector<3x1xf32>
    %60 = vector.broadcast %59 : vector<3x1xf32> to vector<3x128xf32>
    %61 = arith.addf %58, %60 : vector<3x128xf32>
    %62 = vector.extract_strided_slice %61 {offsets = [0, 0], sizes = [1, 128], strides = [1, 1]} : vector<3x128xf32> to vector<1x128xf32>
    %cst_43 = arith.constant 0.000000e+00 : f32
    %63 = vector.broadcast %cst_43 : f32 to vector<1x128xf32>
    %64 = arith.maximumf %62, %63 : vector<1x128xf32>
    %65 = math.absf %62 : vector<1x128xf32>
    %cst_44 = arith.constant 0.000000e+00 : f32
    %66 = vector.broadcast %cst_44 : f32 to vector<1x128xf32>
    %67 = arith.subf %66, %65 : vector<1x128xf32>
    %68 = math.exp %67 : vector<1x128xf32>
    %cst_45 = arith.constant 1.000000e+00 : f32
    %69 = vector.broadcast %cst_45 : f32 to vector<1x128xf32>
    %70 = arith.addf %69, %68 : vector<1x128xf32>
    %71 = math.log %70 : vector<1x128xf32>
    %72 = arith.addf %64, %71 : vector<1x128xf32>
    %73 = vector.extract_strided_slice %61 {offsets = [1, 0], sizes = [1, 128], strides = [1, 1]} : vector<3x128xf32> to vector<1x128xf32>
    %cst_46 = arith.constant 0.000000e+00 : f32
    %74 = vector.broadcast %cst_46 : f32 to vector<1x128xf32>
    %75 = arith.maximumf %73, %74 : vector<1x128xf32>
    %76 = math.absf %73 : vector<1x128xf32>
    %cst_47 = arith.constant 0.000000e+00 : f32
    %77 = vector.broadcast %cst_47 : f32 to vector<1x128xf32>
    %78 = arith.subf %77, %76 : vector<1x128xf32>
    %79 = math.exp %78 : vector<1x128xf32>
    %cst_48 = arith.constant 1.000000e+00 : f32
    %80 = vector.broadcast %cst_48 : f32 to vector<1x128xf32>
    %81 = arith.addf %80, %79 : vector<1x128xf32>
    %82 = math.log %81 : vector<1x128xf32>
    %83 = arith.addf %75, %82 : vector<1x128xf32>
    %84 = vector.extract_strided_slice %61 {offsets = [2, 0], sizes = [1, 128], strides = [1, 1]} : vector<3x128xf32> to vector<1x128xf32>
    %c0_49 = arith.constant 0 : index
    %c0_50 = arith.constant 0 : index
    %85 = vector.load %arg2[%c0_49, %c0_50] : memref<1x128xf32, #tpu.memory_space<vmem>>, vector<1x128xf32>
    %86 = arith.mulf %72, %85 : vector<1x128xf32>
    %87 = arith.addf %86, %84 : vector<1x128xf32>
    %cst_51 = arith.constant 0.000000e+00 : f32
    %88 = vector.broadcast %cst_51 : f32 to vector<1x128xf32>
    %89 = arith.subf %88, %87 : vector<1x128xf32>
    %90 = math.exp %89 : vector<1x128xf32>
    %cst_52 = arith.constant 1.000000e+00 : f32
    %91 = vector.broadcast %cst_52 : f32 to vector<1x128xf32>
    %92 = arith.addf %91, %90 : vector<1x128xf32>
    %93 = tpu.reciprocal %92 {approx = true} : vector<1x128xf32> -> vector<1x128xf32>
    %94 = arith.mulf %83, %93 : vector<1x128xf32>
    %c0_53 = arith.constant 0 : index
    %c0_54 = arith.constant 0 : index
    %95 = vector.load %arg17[%c0_53, %c0_54] : memref<1x128xf32, #tpu.memory_space<vmem>>, vector<1x128xf32>
    tpu.vector_store %arg17[%c0_53, %c0_54], %94 {strides = array<i32>} : memref<1x128xf32, #tpu.memory_space<vmem>>, vector<1x128xf32>,
    return
  }
  func.func @transform_0(%arg0: i32) -> (i32, i32) {
    %c0_i32 = arith.constant 0 : i32
    %c0_i32_0 = arith.constant 0 : i32
    return %c0_i32, %arg0 : i32, i32
  }
  func.func @transform_1(%arg0: i32) -> (i32, i32) {
    %c0_i32 = arith.constant 0 : i32
    %c0_i32_0 = arith.constant 0 : i32
    return %c0_i32, %arg0 : i32, i32
  }
  func.func @transform_2(%arg0: i32) -> (i32, i32) {
    %c0_i32 = arith.constant 0 : i32
    %c0_i32_0 = arith.constant 0 : i32
    %c0_i32_1 = arith.constant 0 : i32
    return %c0_i32, %c0_i32_0 : i32, i32
  }
  func.func @transform_3(%arg0: i32) -> (i32, i32) {
    %c0_i32 = arith.constant 0 : i32
    %c0_i32_0 = arith.constant 0 : i32
    %c0_i32_1 = arith.constant 0 : i32
    return %c0_i32, %c0_i32_0 : i32, i32
  }
  func.func @transform_4(%arg0: i32) -> (i32, i32) {
    %c0_i32 = arith.constant 0 : i32
    %c0_i32_0 = arith.constant 0 : i32
    %c0_i32_1 = arith.constant 0 : i32
    return %c0_i32, %c0_i32_0 : i32, i32
  }
  func.func @transform_5(%arg0: i32) -> (i32, i32) {
    %c0_i32 = arith.constant 0 : i32
    %c0_i32_0 = arith.constant 0 : i32
    %c0_i32_1 = arith.constant 0 : i32
    return %c0_i32, %c0_i32_0 : i32, i32
  }
  func.func @transform_6(%arg0: i32) -> (i32, i32) {
    %c0_i32 = arith.constant 0 : i32
    %c0_i32_0 = arith.constant 0 : i32
    %c0_i32_1 = arith.constant 0 : i32
    return %c0_i32, %c0_i32_0 : i32, i32
  }
  func.func @transform_7(%arg0: i32) -> (i32, i32) {
    %c0_i32 = arith.constant 0 : i32
    %c0_i32_0 = arith.constant 0 : i32
    %c0_i32_1 = arith.constant 0 : i32
    return %c0_i32, %c0_i32_0 : i32, i32
  }
  func.func @transform_8(%arg0: i32) -> (i32, i32) {
    %c0_i32 = arith.constant 0 : i32
    %c0_i32_0 = arith.constant 0 : i32
    %c0_i32_1 = arith.constant 0 : i32
    return %c0_i32, %c0_i32_0 : i32, i32
  }
  func.func @transform_9(%arg0: i32) -> (i32, i32) {
    %c0_i32 = arith.constant 0 : i32
    %c0_i32_0 = arith.constant 0 : i32
    %c0_i32_1 = arith.constant 0 : i32
    return %c0_i32, %c0_i32_0 : i32, i32
  }
  func.func @transform_10(%arg0: i32) -> (i32, i32) {
    %c0_i32 = arith.constant 0 : i32
    %c0_i32_0 = arith.constant 0 : i32
    %c0_i32_1 = arith.constant 0 : i32
    return %c0_i32, %c0_i32_0 : i32, i32
  }
  func.func @transform_11(%arg0: i32) -> (i32, i32) {
    %c0_i32 = arith.constant 0 : i32
    %c0_i32_0 = arith.constant 0 : i32
    %c0_i32_1 = arith.constant 0 : i32
    return %c0_i32, %c0_i32_0 : i32, i32
  }
  func.func @transform_12(%arg0: i32) -> (i32, i32) {
    %c0_i32 = arith.constant 0 : i32
    %c0_i32_0 = arith.constant 0 : i32
    %c0_i32_1 = arith.constant 0 : i32
    return %c0_i32, %c0_i32_0 : i32, i32
  }
  func.func @transform_13(%arg0: i32) -> (i32, i32) {
    %c0_i32 = arith.constant 0 : i32
    %c0_i32_0 = arith.constant 0 : i32
    %c0_i32_1 = arith.constant 0 : i32
    return %c0_i32, %c0_i32_0 : i32, i32
  }
  func.func @transform_14(%arg0: i32) -> (i32, i32) {
    %c0_i32 = arith.constant 0 : i32
    %c0_i32_0 = arith.constant 0 : i32
    %c0_i32_1 = arith.constant 0 : i32
    return %c0_i32, %c0_i32_0 : i32, i32
  }
  func.func @transform_15(%arg0: i32) -> (i32, i32) {
    %c0_i32 = arith.constant 0 : i32
    %c0_i32_0 = arith.constant 0 : i32
    %c0_i32_1 = arith.constant 0 : i32
    return %c0_i32, %c0_i32_0 : i32, i32
  }
  func.func @transform_16(%arg0: i32) -> (i32, i32) {
    %c0_i32 = arith.constant 0 : i32
    %c0_i32_0 = arith.constant 0 : i32
    return %c0_i32, %arg0 : i32, i32
  }
}

</mosaic_0001>

<bundles_post_ra>
// kernel: tpu_custom_call.1
= control target key start
LH: loop header
LB: loop body
LE: loop exit
PB: predicated region body
PF: predicated region fallthrough
CT: control target
= control target key end

     0   :  { %s3932_s0 = inlined_call_operand.vmem [shape: bf16[9,128], index: 0, kind: input, shape index: {}]   ;;  %s3933_s1 = inlined_call_operand.vmem [shape: f32[1,128], index: 1, kind: input, shape index: {}]   ;;  %s3934_s2 = inlined_call_operand.vmem [shape: bf16[50,9], index: 2, kind: input, shape index: {}]   ;;  %s3935_s3 = inlined_call_operand.vmem [shape: bf16[64,50], index: 3, kind: input, shape index: {}]   ;;  %s3936_s4 = inlined_call_operand.vmem [shape: bf16[512,32], index: 4, kind: input, shape index: {}]   ;;  %s3937_s5 = inlined_call_operand.vmem [shape: f32[512,1], index: 5, kind: input, shape index: {}]   ;;  %s3938_s6 = inlined_call_operand.vmem [shape: bf16[128,512], index: 6, kind: input, shape index: {}]   ;;  %s3939_s7 = inlined_call_operand.vmem [shape: f32[128,1], index: 7, kind: input, shape index: {}]   ;;  %s3940_s8 = inlined_call_operand.vmem [shape: bf16[64,128], index: 8, kind: input, shape index: {}]   ;;  %s3941_s9 = inlined_call_operand.vmem [shape: f32[64,1], index: 9, kind: input, shape index: {}]   ;;  %s3942_s10 = inlined_call_operand.vmem [shape: bf16[32,64], index: 10, kind: input, shape index: {}]   ;;  %s3943_s11 = inlined_call_operand.vmem [shape: f32[32,1], index: 11, kind: input, shape index: {}]   ;;  %s3944_s12 = inlined_call_operand.vmem [shape: bf16[8,32], index: 12, kind: input, shape index: {}]   ;;  %s3945_s13 = inlined_call_operand.vmem [shape: f32[8,1], index: 13, kind: input, shape index: {}]   ;;  %s3946_s14 = inlined_call_operand.vmem [shape: bf16[3,8], index: 14, kind: input, shape index: {}]   ;;  %s3947_s15 = inlined_call_operand.vmem [shape: f32[3,1], index: 15, kind: input, shape index: {}]   ;;  %s3948_s16 = inlined_call_operand.hbm [shape: f32[1,128], index: 16, kind: output, shape index: {}]  }
   0x1   :  { %3951 = sst [smem:[#allocation31_spill]] %s3932_s0 }
   0x2   :  { %s3952_s23 = sld [smem:[#allocation31_spill]]  ;;  %vm100_vm0 = vcmask 1043456   ;;  %vm101_vm1 = vcmask 1044480   ;;  %v2803_v1 = vld [vmem:[%s3934_s2] sm:$0xff]   ;;  %v2927_v2 = vmov 65535   ;;  %vm87_vm2 = vcmask 72704  }
   0x3   :  { %v102_v3 = vsel %vm100_vm0, 4294967295, %v2927_v2  ;;  %2651 = vmatprep.mubr.msk.bf16.mxu0 %vm87_vm2, %v2803_v1  ;;  %v2804_v6 = vld [vmem:[%s3934_s2 + $0x8] sm:$0xff]   ;;  %v2805_v7 = vld [vmem:[%s3934_s2 + $0x10] sm:$0xff]   ;;  %v2806_v8 = vld [vmem:[%s3934_s2 + $0x18] ss:$0 sps:$4 sm:$0x11]  }
   0x4   :  { %v103_v4 = vsel %vm101_vm1, %v102_v3, 0 }
   0x8   :  { %v2802_v0 = vld [vmem:[%s3952_s23] sm:$0x1f]  }
   0x9   :  { %v105_v5 = vand.u32 %v2802_v0, %v103_v4 }
   0xb   :  { %2649 = vmatprep.subr.bf16.mxu0 %v105_v5 }
   0xc   :  { %2650 = vmatpush3.bf16.msra.mxu0 %v105_v5 }
   0xf   :  { %2652 = vmatmul.mubr.msk.bf16.vlgmr.msra.gmra.mxu0 %vm87_vm2, %v2804_v6 }
  0x10   :  { %2655 = vmatprep.mubr.msk.bf16.mxu0 %vm87_vm2, %v2805_v7 }
  0x17   :  { %2656 = vmatmul.mubr.msk.bf16.gmra.mxu0 %vm87_vm2, %v2806_v8 }
  0x18   :  { %21 = vsyncpa [#allocation3], 0  ;;  %v2807_v9 = vld [vmem:[%s3935_s3] sm:$0xff]   ;;  %vm232_vm3 = vcmask 408576   ;;  %v418_v10 = vld [vmem:[%s3937_s5 + $0xf0] sm:$0xff]  ;;  %v2928_v12 = vmov 0   ;;  %v171_v43 = vlaneseq }
  0x19   :  { %2667 = vmatprep.mubr.msk.bf16.mxu1 %vm232_vm3, %v2807_v9  ;;  %v402_v11 = vld [vmem:[%s3937_s5 + $0x70] sm:$0xff]  ;;  %2801 = vset.pattern.permute.xlu1 %v2928_v12  ;;  %v419_v13 = vld [vmem:[%s3937_s5 + $0xf8] sm:$0xff]  ;;  %v416_v15 = vld [vmem:[%s3937_s5 + $0xe0] sm:$0xff]  ;;  %v3949_v57 = vmov 0.0   ;;  %vm245_vm5 = vcmask 1040384   ;;  %vm932_vm15 = vcmask 261120  }
  0x1a   :  { %2800 = vset.pattern.permute.xlu0 %v2928_v12  ;;  %524 = vperm.xlu1 %2801, %v402_v11   ;;  %v403_v14 = vld [vmem:[%s3937_s5 + $0x78] sm:$0xff]  ;;  %v417_v16 = vld [vmem:[%s3937_s5 + $0xe8] sm:$0xff]  ;;  %v400_v18 = vld [vmem:[%s3937_s5 + $0x60] sm:$0xff]  ;;  %v172_v44 = vshrl.u32 %v171_v43, 7  ;;  %v2930_v7 = vmov 1.0|1.0  }
  0x1b   :  { %604 = vperm.xlu0 %2800, %v418_v10   ;;  %v401_v17 = vld [vmem:[%s3937_s5 + $0x68] sm:$0xff]  ;;  %v415_v19 = vld [vmem:[%s3937_s5 + $0xd8] sm:$0xff]  ;;  %v414_v20 = vld [vmem:[%s3937_s5 + $0xd0] sm:$0xff]  ;;  %vm2115_vm1 = vcmask 523264   ;;  %vm2931_vm2 = vmmov 0   ;;  %s2932_s23 = smov [#allocation2]  }
  0x1c   :  { %v399_v21 = vld [vmem:[%s3937_s5 + $0x58] sm:$0xff]  ;;  %v398_v22 = vld [vmem:[%s3937_s5 + $0x50] sm:$0xff]  ;;  %v413_v23 = vld [vmem:[%s3937_s5 + $0xc8] sm:$0xff]  ;;  %v178_v46 = vadd.s32 48, %v172_v44  ;;  %v175_v50 = vadd.s32 24, %v172_v44  ;;  %v176_v52 = vadd.s32 32, %v172_v44  ;;  %v179_v6 = vcvt.s32.f32 %v172_v44 }
  0x1d   :  { %v412_v24 = vld [vmem:[%s3937_s5 + $0xc0] sm:$0xff]  ;;  %v397_v25 = vld [vmem:[%s3937_s5 + $0x48] sm:$0xff]  ;;  %v411_v27 = vld [vmem:[%s3937_s5 + $0xb8] sm:$0xff]  ;;  %v177_v53 = vadd.s32 40, %v172_v44  ;;  %v174_v55 = vadd.s32 16, %v172_v44  ;;  %v173_v60 = vadd.s32 8, %v172_v44 }
  0x1e   :  { %529 = vperm.xlu1 %2801, %v403_v14   ;;  %v396_v26 = vld [vmem:[%s3937_s5 + $0x40] sm:$0xff]  ;;  %v410_v28 = vld [vmem:[%s3937_s5 + $0xb0] sm:$0xff]  ;;  %v395_v29 = vld [vmem:[%s3937_s5 + $0x38] sm:$0xff]  ;;  %v185_v49 = vcvt.s32.f32 %v178_v46  ;;  %v182_v56 = vcvt.s32.f32 %v175_v50  ;;  %v183_v61 = vcvt.s32.f32 %v176_v52  ;;  %s2314_s24 = sshll.u32 %s2932_s23, 4  ;;  %s2315_s24 = int_to_ptr.vmem [resolvable:$true] %s2314_s24 }
  0x1f   :  { %609 = vperm.xlu0 %2800, %v419_v13   ;;  %v394_v30 = vld [vmem:[%s3937_s5 + $0x30] sm:$0xff]  ;;  %v409_v31 = vld [vmem:[%s3937_s5 + $0xa8] sm:$0xff]  ;;  %v408_v32 = vld [vmem:[%s3937_s5 + $0xa0] sm:$0xff]  ;;  %v184_v63 = vcvt.s32.f32 %v177_v53  ;;  %v181_v1 = vcvt.s32.f32 %v174_v55  ;;  %v180_v5 = vcvt.s32.f32 %v173_v60  ;;  %s2905_s25 = scalar_lea.vmem %s2315_s24, 16  ;;  %p2910_p1 = scmp.lt.s32.totalorder %s2315_s24, %s2315_s24 }
  0x20   :  { %v393_v33 = vld [vmem:[%s3937_s5 + $0x28] sm:$0xff]  ;;  %v392_v34 = vld [vmem:[%s3937_s5 + $0x20] sm:$0xff]  ;;  %v407_v35 = vld [vmem:[%s3937_s5 + $0x98] sm:$0xff]  ;;  %p2906_p0 = scmp.ne.s32.totalorder %s2315_s24, %s2905_s25 }
  0x21   :  { %v406_v36 = vld [vmem:[%s3937_s5 + $0x90] sm:$0xff]  ;;  %v391_v37 = vld [vmem:[%s3937_s5 + $0x18] sm:$0xff]  ;;  %v405_v39 = vld [vmem:[%s3937_s5 + $0x88] sm:$0xff] }
  0x22   :  { %599 = vperm.xlu1 %2801, %v417_v16   ;;  %v390_v38 = vld [vmem:[%s3937_s5 + $0x10] sm:$0xff]  ;;  %v404_v40 = vld [vmem:[%s3937_s5 + $0x80] sm:$0xff]  ;;  %v389_v41 = vld [vmem:[%s3937_s5 + $0x8] sm:$0xff] }
  0x23   :  { %594 = vperm.xlu0 %2800, %v416_v15   ;;  %v388_v42 = vld [vmem:[%s3937_s5] sm:$0xff]  ;;  %v2808_v8 = vld [vmem:[%s3935_s3 + $0x8] sm:$0xff]   ;;  %v2809_v9 = vld [vmem:[%s3935_s3 + $0x10] sm:$0xff]  }
  0x24   :  { %v2810_v10 = vld [vmem:[%s3935_s3 + $0x18] sm:$0xff]   ;;  %v450_v12 = vld [vmem:[%s3937_s5 + $0x1f0] sm:$0xff]  ;;  %v449_v15 = vld [vmem:[%s3937_s5 + $0x1e8] sm:$0xff] }
  0x25   :  { %v451_v11 = vld [vmem:[%s3937_s5 + $0x1f8] sm:$0xff]  ;;  %v434_v14 = vld [vmem:[%s3937_s5 + $0x170] sm:$0xff]  ;;  %v448_v16 = vld [vmem:[%s3937_s5 + $0x1e0] sm:$0xff] }
  0x26   :  { %519 = vperm.xlu1 %2801, %v401_v17   ;;  %v435_v13 = vld [vmem:[%s3937_s5 + $0x178] sm:$0xff]  ;;  %v433_v17 = vld [vmem:[%s3937_s5 + $0x168] sm:$0xff]  ;;  %v420_v43 = vld [vmem:[%s3937_s5 + $0x100] sm:$0xff] }
  0x27   :  { %514 = vperm.xlu0 %2800, %v400_v18   ;;  %v432_v18 = vld [vmem:[%s3937_s5 + $0x160] sm:$0xff]  ;;  %v1461_v44 = vld [vmem:[%s3939_s7 + $0x78] sm:$0xff]  ;;  %v1459_v46 = vld [vmem:[%s3939_s7 + $0x68] sm:$0xff] }
  0x28   :  { %v1455_v50 = vld [vmem:[%s3939_s7 + $0x48] sm:$0xff]  ;;  %v1453_v52 = vld [vmem:[%s3939_s7 + $0x38] sm:$0xff]  ;;  %v1452_v53 = vld [vmem:[%s3939_s7 + $0x30] sm:$0xff] }
  0x29   :  { %v1450_v55 = vld [vmem:[%s3939_s7 + $0x20] sm:$0xff] }
  0x2a   :  { %589 = vperm.xlu1 %2801, %v415_v19   ;;  %v447_v19 = vld [vmem:[%s3937_s5 + $0x1d8] sm:$0xff]  ;;  %v1446_v60 = vld [vmem:[%s3939_s7] sm:$0xff] }
  0x2b   :  { %584 = vperm.xlu0 %2800, %v414_v20   ;;  %v446_v20 = vld [vmem:[%s3937_s5 + $0x1d0] sm:$0xff]  ;;  %v1928_v4 = vld [vmem:[%s3941_s9] sm:$0xff] }
  0x2e   :  { %509 = vperm.xlu1 %2801, %v399_v21   ;;  %v431_v21 = vld [vmem:[%s3937_s5 + $0x158] sm:$0xff] }
  0x2f   :  { %504 = vperm.xlu0 %2800, %v398_v22   ;;  %v430_v22 = vld [vmem:[%s3937_s5 + $0x150] sm:$0xff] }
  0x32   :  { %579 = vperm.xlu1 %2801, %v413_v23   ;;  %v2811_v23 = vld [vmem:[%s3936_s4] sm:$0xff]  }
  0x33   :  { %574 = vperm.xlu0 %2800, %v412_v24   ;;  %2679 = vmatprep.mubr.msk.bf16.mxu0 %vm932_vm15, %v2811_v23  ;;  %v445_v24 = vld [vmem:[%s3937_s5 + $0x1c8] sm:$0xff] }
  0x36   :  { %499 = vperm.xlu1 %2801, %v397_v25   ;;  %v444_v25 = vld [vmem:[%s3937_s5 + $0x1c0] sm:$0xff] }
  0x37   :  { %494 = vperm.xlu0 %2800, %v396_v26   ;;  %v429_v26 = vld [vmem:[%s3937_s5 + $0x148] sm:$0xff] }
  0x3a   :  { %569 = vperm.xlu1 %2801, %v411_v27   ;;  %v428_v27 = vld [vmem:[%s3937_s5 + $0x140] sm:$0xff] }
  0x3b   :  { %564 = vperm.xlu0 %2800, %v410_v28   ;;  %v443_v28 = vld [vmem:[%s3937_s5 + $0x1b8] sm:$0xff] }
  0x3e   :  { %489 = vperm.xlu1 %2801, %v395_v29   ;;  %v442_v29 = vld [vmem:[%s3937_s5 + $0x1b0] sm:$0xff] }
  0x3f   :  { %484 = vperm.xlu0 %2800, %v394_v30   ;;  %v427_v30 = vld [vmem:[%s3937_s5 + $0x138] sm:$0xff] }
  0x42   :  { %559 = vperm.xlu1 %2801, %v409_v31   ;;  %v426_v31 = vld [vmem:[%s3937_s5 + $0x130] sm:$0xff] }
  0x43   :  { %554 = vperm.xlu0 %2800, %v408_v32   ;;  %v441_v32 = vld [vmem:[%s3937_s5 + $0x1a8] sm:$0xff] }
  0x46   :  { %479 = vperm.xlu1 %2801, %v393_v33   ;;  %v440_v33 = vld [vmem:[%s3937_s5 + $0x1a0] sm:$0xff] }
  0x47   :  { %474 = vperm.xlu0 %2800, %v392_v34   ;;  %v425_v34 = vld [vmem:[%s3937_s5 + $0x128] sm:$0xff] }
  0x4a   :  { %549 = vperm.xlu1 %2801, %v407_v35   ;;  %v424_v35 = vld [vmem:[%s3937_s5 + $0x120] sm:$0xff] }
  0x4b   :  { %544 = vperm.xlu0 %2800, %v406_v36   ;;  %v439_v36 = vld [vmem:[%s3937_s5 + $0x198] sm:$0xff] }
  0x4e   :  { %469 = vperm.xlu1 %2801, %v391_v37   ;;  %v438_v37 = vld [vmem:[%s3937_s5 + $0x190] sm:$0xff] }
  0x4f   :  { %464 = vperm.xlu0 %2800, %v390_v38   ;;  %v423_v38 = vld [vmem:[%s3937_s5 + $0x118] sm:$0xff] }
  0x52   :  { %539 = vperm.xlu1 %2801, %v405_v39   ;;  %v422_v39 = vld [vmem:[%s3937_s5 + $0x110] sm:$0xff] }
  0x53   :  { %534 = vperm.xlu0 %2800, %v404_v40   ;;  %v437_v40 = vld [vmem:[%s3937_s5 + $0x188] sm:$0xff] }
  0x56   :  { %459 = vperm.xlu1 %2801, %v389_v41   ;;  %v436_v41 = vld [vmem:[%s3937_s5 + $0x180] sm:$0xff] }
  0x57   :  { %454 = vperm.xlu0 %2800, %v388_v42   ;;  %v421_v42 = vld [vmem:[%s3937_s5 + $0x108] sm:$0xff] }
  0x5a   :  { %769 = vperm.xlu1 %2801, %v451_v11  }
  0x5b   :  { %764 = vperm.xlu0 %2800, %v450_v12  }
  0x5e   :  { %689 = vperm.xlu1 %2801, %v435_v13  }
  0x5f   :  { %684 = vperm.xlu0 %2800, %v434_v14  }
  0x62   :  { %759 = vperm.xlu1 %2801, %v449_v15  }
  0x63   :  { %754 = vperm.xlu0 %2800, %v448_v16  }
  0x66   :  { %679 = vperm.xlu1 %2801, %v433_v17  }
  0x67   :  { %674 = vperm.xlu0 %2800, %v432_v18  }
  0x6a   :  { %749 = vperm.xlu1 %2801, %v447_v19  }
  0x6b   :  { %744 = vperm.xlu0 %2800, %v446_v20  }
  0x6e   :  { %669 = vperm.xlu1 %2801, %v431_v21  }
  0x6f   :  { %664 = vperm.xlu0 %2800, %v430_v22  }
  0x72   :  { %739 = vperm.xlu1 %2801, %v445_v24  }
  0x73   :  { %734 = vperm.xlu0 %2800, %v444_v25  }
  0x76   :  { %659 = vperm.xlu1 %2801, %v429_v26  }
  0x77   :  { %654 = vperm.xlu0 %2800, %v428_v27  }
  0x7a   :  { %729 = vperm.xlu1 %2801, %v443_v28  }
  0x7b   :  { %724 = vperm.xlu0 %2800, %v442_v29   ;;  %v2812_v29 = vld [vmem:[%s3936_s4 + $0x8] sm:$0xff]  }
  0x7e   :  { %649 = vperm.xlu1 %2801, %v427_v30   ;;  %v2813_v30 = vld [vmem:[%s3936_s4 + $0x10] sm:$0xff]  }
  0x7f   :  { %644 = vperm.xlu0 %2800, %v426_v31   ;;  %v2814_v31 = vld [vmem:[%s3936_s4 + $0x18] sm:$0xff]  }
  0x82   :  { %719 = vperm.xlu1 %2801, %v441_v32   ;;  %v2815_v32 = vld [vmem:[%s3936_s4 + $0x20] sm:$0xff]  }
  0x83   :  { %714 = vperm.xlu0 %2800, %v440_v33   ;;  %v2816_v33 = vld [vmem:[%s3936_s4 + $0x28] sm:$0xff]  }
  0x86   :  { %639 = vperm.xlu1 %2801, %v425_v34   ;;  %v2817_v34 = vld [vmem:[%s3936_s4 + $0x30] sm:$0xff]  }
  0x87   :  { %634 = vperm.xlu0 %2800, %v424_v35   ;;  %v2818_v35 = vld [vmem:[%s3936_s4 + $0x38] sm:$0xff]  }
  0x8a   :  { %709 = vperm.xlu1 %2801, %v439_v36   ;;  %v2819_v36 = vld [vmem:[%s3936_s4 + $0x40] sm:$0xff]  }
  0x8b   :  { %704 = vperm.xlu0 %2800, %v438_v37   ;;  %v2820_v37 = vld [vmem:[%s3936_s4 + $0x48] sm:$0xff]  }
  0x8e   :  { %629 = vperm.xlu1 %2801, %v423_v38   ;;  %v2821_v38 = vld [vmem:[%s3936_s4 + $0x50] sm:$0xff]  }
  0x8f   :  { %624 = vperm.xlu0 %2800, %v422_v39   ;;  %v2822_v39 = vld [vmem:[%s3936_s4 + $0x58] sm:$0xff]  }
  0x92   :  { %699 = vperm.xlu1 %2801, %v437_v40   ;;  %v2823_v40 = vld [vmem:[%s3936_s4 + $0x60] sm:$0xff]  }
  0x93   :  { %694 = vperm.xlu0 %2800, %v436_v41   ;;  %v2824_v41 = vld [vmem:[%s3936_s4 + $0x68] sm:$0xff]  }
  0x96   :  { %619 = vperm.xlu1 %2801, %v421_v42   ;;  %v2825_v42 = vld [vmem:[%s3936_s4 + $0x70] sm:$0xff]  }
  0x97   :  { %614 = vperm.xlu0 %2800, %v420_v43   ;;  %v2826_v43 = vld [vmem:[%s3936_s4 + $0x78] sm:$0xff]  }
  0x9a   :  { %1539 = vperm.xlu1 %2801, %v1461_v44   ;;  %v2827_v44 = vld [vmem:[%s3936_s4 + $0x80] sm:$0xff]  }
  0x9e   :  { %1529 = vperm.xlu1 %2801, %v1459_v46   ;;  %v2829_v46 = vld [vmem:[%s3936_s4 + $0x90] sm:$0xff]  }
  0xcf   :  { %v2653_v45 = vpop.f32.mrf.mxu0 }
  0xd0   :  { %vm188_vm10 = vcmp.eq.f32.partialorder %v181_v1, %v2653_v45  ;;  %v1460_v45 = vld [vmem:[%s3939_s7 + $0x70] sm:$0xff]  ;;  %v1931_v1 = vld [vmem:[%s3941_s9 + $0x18] sm:$0xff] }
  0xd1   :  { %v141_v47 = vpop.f32.mrf.mxu0  ;;  %1534 = vperm.xlu0 %2800, %v1460_v45   ;;  %v2828_v45 = vld [vmem:[%s3936_s4 + $0x88] sm:$0xff]  }
  0xd2   :  { %vm186_vm13 = vcmp.eq.f32.partialorder %v179_v6, %v141_v47  ;;  %v1458_v47 = vld [vmem:[%s3939_s7 + $0x60] sm:$0xff]  ;;  %v2083_v6 = vld [vmem:[%s3943_s11 + $0x10] sm:$0xff] }
  0xd3   :  { %v2654_v48 = vpop.f32.mrf.mxu0 }
  0xd4   :  { %vm3135_vm6 = vcmp.eq.f32.partialorder %v182_v56, %v2654_v48  ;;  %v1457_v48 = vld [vmem:[%s3939_s7 + $0x58] sm:$0xff] }
  0xd5   :  { %v144_v51 = vpop.f32.mrf.mxu0  ;;  %vm2337_vm11 = vmpackc.low %vm3135_vm6, %vm188_vm10  ;;  %1524 = vperm.xlu0 %2800, %v1458_v47   ;;  %1519 = vperm.xlu1 %2801, %v1457_v48   ;;  %v1449_v56 = vld [vmem:[%s3939_s7 + $0x18] sm:$0xff]  ;;  %v2831_v48 = vld [vmem:[%s3936_s4 + $0xa0] sm:$0xff]  }
  0xd6   :  { %vm187_vm12 = vcmp.eq.f32.partialorder %v180_v5, %v144_v51  ;;  %v1454_v51 = vld [vmem:[%s3939_s7 + $0x40] sm:$0xff]  ;;  %v2084_v5 = vld [vmem:[%s3943_s11 + $0x18] sm:$0xff] }
  0xd7   :  { %v2657_v54 = vpop.f32.mrf.mxu0  ;;  %vm2339_vm14 = vmpackc.low %vm187_vm12, %vm186_vm13  ;;  %v2830_v47 = vld [vmem:[%s3936_s4 + $0x98] sm:$0xff]  }
  0xd8   :  { %vm192_vm4 = vcmp.eq.f32.partialorder %v185_v49, %v2657_v54  ;;  %v1456_v49 = vld [vmem:[%s3939_s7 + $0x50] sm:$0xff]  ;;  %v1451_v54 = vld [vmem:[%s3939_s7 + $0x28] sm:$0xff] }
  0xd9   :  { %v199_v58 = vsel %vm192_vm4, 1.0, %v3949_v57  ;;  %v157_v59 = vpop.f32.mrf.mxu0  ;;  %1514 = vperm.xlu0 %2800, %v1456_v49   ;;  %1509 = vperm.xlu1 %2801, %v1455_v50   ;;  %v3423_v49 = vpop.permute.xlu0 %604 }
  0xda   :  { %v203_v62 = vpack.c.bf16 %v199_v58, %v199_v58  ;;  %vm190_vm7 = vcmp.eq.f32.partialorder %v183_v61, %v157_v59  ;;  %v1448_v58 = vld [vmem:[%s3939_s7 + $0x10] sm:$0xff]  ;;  %v1447_v59 = vld [vmem:[%s3939_s7 + $0x8] sm:$0xff]  ;;  %v1935_v61 = vld [vmem:[%s3941_s9 + $0x38] sm:$0xff]  ;;  %v3425_v50 = vpop.permute.xlu1 %524 }
  0xdb   :  { %v2658_v0 = vpop.f32.mrf.mxu0 }
  0xdc   :  { %2793 = vmatprep.subr.msk.bf16.mxu1 %vm245_vm5, %v203_v62  ;;  %v247_v2 = vsel %vm245_vm5, %v203_v62, 0  ;;  %v1934_v62 = vld [vmem:[%s3941_s9 + $0x30] sm:$0xff]  ;;  %v1932_v0 = vld [vmem:[%s3941_s9 + $0x20] sm:$0xff] }
  0xdd   :  { %v160_v3 = vpop.f32.mrf.mxu0  ;;  %2660 = vmatpush3.bf16.msra.mxu1 %v247_v2  ;;  %1504 = vperm.xlu0 %2800, %v1454_v51   ;;  %v1930_v2 = vld [vmem:[%s3941_s9 + $0x10] sm:$0xff]  ;;  %v2832_v51 = vld [vmem:[%s3936_s4 + $0xa8] sm:$0xff]  }
  0xde   :  { %vm191_vm8 = vcmp.eq.f32.partialorder %v184_v63, %v160_v3  ;;  %1499 = vperm.xlu1 %2801, %v1453_v52   ;;  %v1933_v63 = vld [vmem:[%s3941_s9 + $0x28] sm:$0xff]  ;;  %v2833_v52 = vld [vmem:[%s3936_s4 + $0xb0] sm:$0xff]  }
  0xdf   :  { %vm2335_vm9 = vmpackc.low %vm191_vm8, %vm190_vm7  ;;  %v1929_v3 = vld [vmem:[%s3941_s9 + $0x8] sm:$0xff] }
  0xe0   :  { %2661 = vmatprep.subr.msk.bf16.mxu1 %vm2335_vm9, %v2930_v7 }
  0xe1   :  { %2662 = vmatpush3.bf16.msk.msra.mxu1 %vm2335_vm9, %v2930_v7  ;;  %1494 = vperm.xlu0 %2800, %v1452_v53   ;;  %v3433_v53 = vpop.permute.xlu0 %609 }
  0xe2   :  { %2663 = vmatprep.subr.msk.bf16.mxu1 %vm2337_vm11, %v2930_v7  ;;  %1489 = vperm.xlu1 %2801, %v1451_v54   ;;  %v3437_v54 = vpop.permute.xlu1 %529 }
  0xe5   :  { %2664 = vmatpush3.bf16.msk.msra.mxu1 %vm2337_vm11, %v2930_v7  ;;  %1484 = vperm.xlu0 %2800, %v1450_v55   ;;  %v2834_v55 = vld [vmem:[%s3936_s4 + $0xb8] sm:$0xff]  }
  0xe6   :  { %2665 = vmatprep.subr.msk.bf16.mxu1 %vm2339_vm14, %v2930_v7  ;;  %1479 = vperm.xlu1 %2801, %v1449_v56   ;;  %v2835_v56 = vld [vmem:[%s3936_s4 + $0xc0] sm:$0xff]  }
  0xe9   :  { %2666 = vmatpush3.bf16.msk.msra.mxu1 %vm2339_vm14, %v2930_v7  ;;  %1474 = vperm.xlu0 %2800, %v1448_v58   ;;  %v2082_v7 = vld [vmem:[%s3943_s11 + $0x8] sm:$0xff]  ;;  %v3445_v58 = vpop.permute.xlu0 %594 }
  0xea   :  { %1469 = vperm.xlu1 %2801, %v1447_v59   ;;  %v3447_v59 = vpop.permute.xlu1 %599 }
  0xec   :  { %2668 = vmatmul.mubr.msk.bf16.vlgmr.msra.gmra.mxu1 %vm232_vm3, %v2808_v8  ;;  %v2081_v8 = vld [vmem:[%s3943_s11] sm:$0xff] }
  0xed   :  { %2671 = vmatprep.mubr.msk.bf16.mxu1 %vm232_vm3, %v2809_v9  ;;  %1464 = vperm.xlu0 %2800, %v1446_v60   ;;  %v2230_v9 = vld [vmem:[%s3947_s15] sm:$0x7]  ;;  %v3451_v60 = vpop.permute.xlu0 %514 }
  0xee   :  { %1973 = vperm.xlu1 %2801, %v1935_v61   ;;  %v2836_v61 = vld [vmem:[%s3936_s4 + $0xc8] sm:$0xff]  }
  0xf1   :  { %1968 = vperm.xlu0 %2800, %v1934_v62   ;;  %v2837_v62 = vld [vmem:[%s3936_s4 + $0xd0] sm:$0xff]  }
  0xf2   :  { %1963 = vperm.xlu1 %2801, %v1933_v63   ;;  %v3459_v63 = vpop.permute.xlu1 %519 }
  0xf4   :  { %2672 = vmatmul.mubr.msk.bf16.gmra.mxu1 %vm232_vm3, %v2810_v10  ;;  %v2178_v10 = vld [vmem:[%s3945_s13] sm:$0xff]  ;;  %vm2236_vm3 = vcmask 64512  }
  0xf5   :  { %1958 = vperm.xlu0 %2800, %v1932_v0   ;;  %v3463_v0 = vpop.permute.xlu0 %584 }
  0xf6   :  { %1953 = vperm.xlu1 %2801, %v1931_v1   ;;  %v3465_v1 = vpop.permute.xlu1 %589 }
  0xf9   :  { %1948 = vperm.xlu0 %2800, %v1930_v2   ;;  %v2838_v2 = vld [vmem:[%s3936_s4 + $0xd8] sm:$0xff]  }
  0xfa   :  { %1943 = vperm.xlu1 %2801, %v1929_v3   ;;  %v2839_v3 = vld [vmem:[%s3936_s4 + $0xe0] sm:$0xff]  }
  0xfd   :  { %1938 = vperm.xlu0 %2800, %v1928_v4   ;;  %v3473_v4 = vpop.permute.xlu0 %504 }
  0xfe   :  { %2102 = vperm.xlu1 %2801, %v2084_v5   ;;  %v3477_v5 = vpop.permute.xlu1 %509 }
 0x101   :  { %2097 = vperm.xlu0 %2800, %v2083_v6   ;;  %v2840_v6 = vld [vmem:[%s3936_s4 + $0xe8] sm:$0xff]  }
 0x102   :  { %2092 = vperm.xlu1 %2801, %v2082_v7   ;;  %v2841_v7 = vld [vmem:[%s3936_s4 + $0xf0] sm:$0xff]  }
 0x105   :  { %2087 = vperm.xlu0 %2800, %v2081_v8   ;;  %v3485_v8 = vpop.permute.xlu0 %574 }
 0x106   :  { %2233 = vperm.xlu1 %2801, %v2230_v9   ;;  %v3487_v9 = vpop.permute.xlu1 %579 }
 0x109   :  { %2181 = vperm.xlu0 %2800, %v2178_v10   ;;  %v3491_v10 = vpop.permute.xlu0 %494 }
 0x1ac   :  { %v2669_v11 = vpop.f32.mrf.mxu1 }
 0x1ad   :  { %v316_v17 = vmul.f32 %v2669_v11, %v2669_v11  ;;  %v2842_v11 = vld [vmem:[%s3936_s4 + $0xf8] sm:$0xff]  }
 0x1ae   :  { %v283_v12 = vpop.f32.mrf.mxu1 }
 0x1af   :  { %v314_v20 = vmul.f32 %v283_v12, %v283_v12  ;;  %v3496_v12 = vpop.permute.xlu1 %499 }
 0x1b0   :  { %v2670_v13 = vpop.f32.mrf.mxu1 }
 0x1b1   :  { %v317_v18 = vmul.f32 %v2670_v13, %v2670_v13  ;;  %v3499_v13 = vpop.permute.xlu0 %564 }
 0x1b2   :  { %v286_v14 = vpop.f32.mrf.mxu1 }
 0x1b3   :  { %v315_v21 = vmul.f32 %v286_v14, %v286_v14  ;;  %v3501_v14 = vpop.permute.xlu1 %569 }
 0x1b4   :  { %v2673_v15 = vpop.f32.mrf.mxu1 }
 0x1b5   :  { %v320_v22 = vsub.f32 %v316_v17, %v2673_v15  ;;  %v485_v15 = vpop.permute.xlu0 %484 }
 0x1b6   :  { %v299_v16 = vpop.f32.mrf.mxu1 }
 0x1b7   :  { %v318_v25 = vsub.f32 %v314_v20, %v299_v16  ;;  %v490_v16 = vpop.permute.xlu1 %489 }
 0x1b8   :  { %v2674_v19 = vpop.f32.mrf.mxu1 }
 0x1b9   :  { %v321_v23 = vsub.f32 %v317_v18, %v2674_v19  ;;  %v3503_v17 = vpop.permute.xlu0 %554 }
 0x1ba   :  { %v302_v24 = vpop.f32.mrf.mxu1 }
 0x1bb   :  { %v387_v26 = vpack.c.bf16 %v321_v23, %v320_v22  ;;  %v319_v27 = vsub.f32 %v315_v21, %v302_v24  ;;  %v3505_v18 = vpop.permute.xlu1 %559 }
 0x1bd   :  { %v386_v28 = vpack.c.bf16 %v319_v27, %v318_v25  ;;  %2675 = vmatprep.subr.bf16.mxu0 %v387_v26  ;;  %v475_v19 = vpop.permute.xlu0 %474  ;;  %v2845_v27 = vld [vmem:[%s3938_s6 + $0x4] ss:$16 sps:$4 sm:$0xff]  }
 0x1be   :  { %2676 = vmatpush3.bf16.msra.mxu0 %v387_v26  ;;  %1734 = vmatprep.mubr.bf16.mxu1 %v2845_v27 }
 0x1bf   :  { %2677 = vmatprep.subr.bf16.mxu0 %v386_v28  ;;  %v480_v20 = vpop.permute.xlu1 %479 }
 0x1c1   :  { %v3507_v21 = vpop.permute.xlu0 %544 }
 0x1c2   :  { %2678 = vmatpush3.bf16.msra.mxu0 %v386_v28 }
 0x1c3   :  { %v3509_v22 = vpop.permute.xlu1 %549 }
 0x1c5   :  { %2680 = vmatmul.mubr.msk.bf16.vlgmr.msra.gmra.mxu0 %vm932_vm15, %v2812_v29  ;;  %v465_v23 = vpop.permute.xlu0 %464 }
 0x1c6   :  { %2683 = vmatprep.mubr.msk.bf16.mxu0 %vm932_vm15, %v2813_v30 }
 0x1c7   :  { %v470_v24 = vpop.permute.xlu1 %469 }
 0x1c9   :  { %v3511_v25 = vpop.permute.xlu0 %534 }
 0x1cb   :  { %v3513_v26 = vpop.permute.xlu1 %539 }
 0x1cd   :  { %2684 = vmatmul.mubr.msk.bf16.gmra.mxu0 %vm932_vm15, %v2814_v31  ;;  %v455_v28 = vpop.permute.xlu0 %454 }
 0x1ce   :  { %2687 = vmatprep.mubr.msk.bf16.mxu0 %vm932_vm15, %v2815_v32 }
 0x1cf   :  { %v460_v29 = vpop.permute.xlu1 %459 }
 0x1d1   :  { %v3518_v30 = vpop.permute.xlu0 %764 }
 0x1d2   :  { %3955 = vst [vmem:[#allocation5_spill] sm:$0xff] %v3518_v30 }
 0x1d3   :  { %v3520_v31 = vpop.permute.xlu1 %769 }
 0x1d4   :  { %3956 = vst [vmem:[#allocation6_spill] sm:$0xff] %v3520_v31 }
 0x1d5   :  { %2688 = vmatmul.mubr.msk.bf16.gmra.mxu0 %vm932_vm15, %v2816_v33  ;;  %v3522_v32 = vpop.permute.xlu0 %684 }
 0x1d6   :  { %2691 = vmatprep.mubr.msk.bf16.mxu0 %vm932_vm15, %v2817_v34  ;;  %3957 = vst [vmem:[#allocation7_spill] sm:$0xff] %v3522_v32 }
 0x1d7   :  { %v3524_v33 = vpop.permute.xlu1 %689 }
 0x1d8   :  { %3958 = vst [vmem:[#allocation8_spill] sm:$0xff] %v3524_v33 }
 0x1d9   :  { %v3526_v34 = vpop.permute.xlu0 %754 }
 0x1da   :  { %3959 = vst [vmem:[#allocation9_spill] sm:$0xff] %v3526_v34 }
 0x1dd   :  { %2692 = vmatmul.mubr.msk.bf16.gmra.mxu0 %vm932_vm15, %v2818_v35  ;;  %v3528_v35 = vpop.permute.xlu1 %759 }
 0x1de   :  { %2695 = vmatprep.mubr.msk.bf16.mxu0 %vm932_vm15, %v2819_v36  ;;  %3960 = vst [vmem:[#allocation10_spill] sm:$0xff] %v3528_v35  ;;  %v3530_v36 = vpop.permute.xlu0 %674 }
 0x1df   :  { %3961 = vst [vmem:[#allocation11_spill] sm:$0xff] %v3530_v36 }
 0x1e5   :  { %2696 = vmatmul.mubr.msk.bf16.gmra.mxu0 %vm932_vm15, %v2820_v37  ;;  %v3532_v37 = vpop.permute.xlu1 %679 }
 0x1e6   :  { %2699 = vmatprep.mubr.msk.bf16.mxu0 %vm932_vm15, %v2821_v38  ;;  %3962 = vst [vmem:[#allocation12_spill] sm:$0xff] %v3532_v37 }
 0x1ed   :  { %2700 = vmatmul.mubr.msk.bf16.gmra.mxu0 %vm932_vm15, %v2822_v39  ;;  %v3534_v39 = vpop.permute.xlu0 %744 }
 0x1ee   :  { %2703 = vmatprep.mubr.msk.bf16.mxu0 %vm932_vm15, %v2823_v40  ;;  %3963 = vst [vmem:[#allocation13_spill] sm:$0xff] %v3534_v39 }
 0x1f5   :  { %2704 = vmatmul.mubr.msk.bf16.gmra.mxu0 %vm932_vm15, %v2824_v41 }
 0x1f6   :  { %2707 = vmatprep.mubr.msk.bf16.mxu0 %vm932_vm15, %v2825_v42  ;;  %v3536_v42 = vpop.permute.xlu1 %749 }
 0x1f7   :  { %3964 = vst [vmem:[#allocation14_spill] sm:$0xff] %v3536_v42 }
 0x1fd   :  { %2708 = vmatmul.mubr.msk.bf16.gmra.mxu0 %vm932_vm15, %v2826_v43 }
 0x1fe   :  { %2711 = vmatprep.mubr.msk.bf16.mxu0 %vm932_vm15, %v2827_v44 }
 0x205   :  { %2712 = vmatmul.mubr.msk.bf16.gmra.mxu0 %vm932_vm15, %v2828_v45 }
 0x206   :  { %2715 = vmatprep.mubr.msk.bf16.mxu0 %vm932_vm15, %v2829_v46 }
 0x20d   :  { %2716 = vmatmul.mubr.msk.bf16.gmra.mxu0 %vm932_vm15, %v2830_v47 }
 0x20e   :  { %2719 = vmatprep.mubr.msk.bf16.mxu0 %vm932_vm15, %v2831_v48 }
 0x215   :  { %2720 = vmatmul.mubr.msk.bf16.gmra.mxu0 %vm932_vm15, %v2832_v51 }
 0x216   :  { %2723 = vmatprep.mubr.msk.bf16.mxu0 %vm932_vm15, %v2833_v52  ;;  %v3538_v52 = vpop.permute.xlu0 %664 }
 0x217   :  { %3965 = vst [vmem:[#allocation15_spill] sm:$0xff] %v3538_v52 }
 0x21a   :  { %v3546_v27 = vpop.permute.xlu0 %734 }
 0x21b   :  { %3969 = vst [vmem:[#allocation19_spill] sm:$0xff] %v3546_v27 }
 0x21d   :  { %2724 = vmatmul.mubr.msk.bf16.gmra.mxu0 %vm932_vm15, %v2834_v55 }
 0x21e   :  { %2727 = vmatprep.mubr.msk.bf16.mxu0 %vm932_vm15, %v2835_v56 }
 0x225   :  { %2728 = vmatmul.mubr.msk.bf16.gmra.mxu0 %vm932_vm15, %v2836_v61 }
 0x226   :  { %2731 = vmatprep.mubr.msk.bf16.mxu0 %vm932_vm15, %v2837_v62 }
 0x22d   :  { %2732 = vmatmul.mubr.msk.bf16.gmra.mxu0 %vm932_vm15, %v2838_v2  ;;  %v3542_v2 = vpop.permute.xlu1 %669 }
 0x22e   :  { %2735 = vmatprep.mubr.msk.bf16.mxu0 %vm932_vm15, %v2839_v3  ;;  %3967 = vst [vmem:[#allocation17_spill] sm:$0xff] %v3542_v2 }
 0x235   :  { %2736 = vmatmul.mubr.msk.bf16.gmra.mxu0 %vm932_vm15, %v2840_v6 }
 0x236   :  { %2739 = vmatprep.mubr.msk.bf16.mxu0 %vm932_vm15, %v2841_v7 }
 0x23d   :  { %2740 = vmatmul.mubr.msk.bf16.gmra.mxu0 %vm932_vm15, %v2842_v11 }
 0x285   :  { %v2681_v38 = vpop.f32.mrf.mxu0 }
 0x286   :  { %v1072_v41 = vadd.f32 %v2681_v38, %v465_v23 }
 0x287   :  { %v1063_v40 = vpop.f32.mrf.mxu0 }
 0x288   :  { %v1064_v44 = vadd.f32 %v1063_v40, %v455_v28  ;;  %v1320_v47 = vmax.f32 %v1072_v41, 0.0  ;;  %v3548_v41 = vpop.permute.xlu1 %739 }
 0x289   :  { %v2682_v43 = vpop.f32.mrf.mxu0  ;;  %3970 = vst [vmem:[#allocation20_spill] sm:$0xff] %v3548_v41 }
 0x28a   :  { %v1075_v45 = vadd.f32 %v2682_v43, %v470_v24  ;;  %v1318_v56 = vmax.f32 %v1064_v44, 0.0 }
 0x28b   :  { %v1066_v46 = vpop.f32.mrf.mxu0 }
 0x28c   :  { %v1321_v48 = vmax.f32 %v1075_v45, 0.0  ;;  %v1067_v51 = vadd.f32 %v1066_v46, %v460_v29 }
 0x28d   :  { %v2685_v55 = vpop.f32.mrf.mxu0 }
 0x28e   :  { %v3540_v61 = vpack.c.bf16 %v1321_v48, %v1320_v47  ;;  %v1319_v62 = vmax.f32 %v1067_v51, 0.0  ;;  %v1088_v7 = vadd.f32 %v2685_v55, %v485_v15  ;;  %v3560_v48 = vpop.permute.xlu1 %659 }
 0x28f   :  { %v1079_v3 = vpop.f32.mrf.mxu0  ;;  %3973 = vst [vmem:[#allocation23_spill] sm:$0xff] %v3560_v48 }
 0x290   :  { %3966 = vst [vmem:[#allocation16_spill] sm:$0xff] %v3540_v61  ;;  %v3544_v6 = vpack.c.bf16 %v1319_v62, %v1318_v56  ;;  %v1080_v23 = vadd.f32 %v1079_v3, %v475_v19  ;;  %v1324_v29 = vmax.f32 %v1088_v7, 0.0  ;;  %v3558_v19 = vpop.permute.xlu0 %654 }
 0x291   :  { %v2686_v11 = vpop.f32.mrf.mxu0  ;;  %3972 = vst [vmem:[#allocation22_spill] sm:$0xff] %v3558_v19 }
 0x292   :  { %3968 = vst [vmem:[#allocation18_spill] sm:$0xff] %v3544_v6  ;;  %v1091_v24 = vadd.f32 %v2686_v11, %v490_v16  ;;  %v1322_v44 = vmax.f32 %v1080_v23, 0.0  ;;  %v3566_v62 = vpop.permute.xlu1 %729 }
 0x293   :  { %v1082_v28 = vpop.f32.mrf.mxu0  ;;  %3975 = vst [vmem:[#allocation25_spill] sm:$0xff] %v3566_v62 }
 0x294   :  { %v1325_v38 = vmax.f32 %v1091_v24, 0.0  ;;  %v1083_v40 = vadd.f32 %v1082_v28, %v480_v20  ;;  %v3564_v55 = vpop.permute.xlu0 %724 }
 0x295   :  { %v3550_v43 = vpop.f32.mrf.mxu0  ;;  %3974 = vst [vmem:[#allocation24_spill] sm:$0xff] %v3564_v55 }
 0x296   :  { %v3552_v45 = vpack.c.bf16 %v1325_v38, %v1324_v29  ;;  %v1323_v46 = vmax.f32 %v1083_v40, 0.0  ;;  %v3572_v24 = vpop.permute.xlu1 %649 }
 0x297   :  { %v3554_v47 = vpop.f32.mrf.mxu0 }
 0x298   :  { %v3556_v15 = vpack.c.bf16 %v1323_v46, %v1322_v44  ;;  %v3568_v11 = vpop.permute.xlu0 %644 }
 0x299   :  { %v2690_v16 = vpop.f32.mrf.mxu0 }
 0x29a   :  { %3971 = vst [vmem:[#allocation21_spill] sm:$0xff] %v3556_v15  ;;  %v3582_v44 = vpop.permute.xlu1 %719 }
 0x29b   :  { %v3562_v51 = vpop.f32.mrf.mxu0  ;;  %3978 = vst [vmem:[#allocation28_spill] sm:$0xff] %v3582_v44 }
 0x29c   :  { %v3578_v38 = vpop.permute.xlu0 %714 }
 0x29d   :  { %v2693_v20 = vpop.f32.mrf.mxu0  ;;  %3977 = vst [vmem:[#allocation27_spill] sm:$0xff] %v3578_v38 }
 0x29e   :  { %v3590_v62 = vpop.permute.xlu1 %639  ;;  %v1120_v34 = vadd.f32 %v2693_v20, %v3425_v50 }
 0x29f   :  { %v1111_v56 = vpop.f32.mrf.mxu0 }
 0x2a0   :  { %v3588_v55 = vpop.permute.xlu0 %634  ;;  %v1332_v50 = vmax.f32 %v1120_v34, 0.0 }
 0x2a1   :  { %v2694_v3 = vpop.f32.mrf.mxu0 }
 0x2a2   :  { %v3596_v38 = vpop.permute.xlu1 %709  ;;  %v1123_v42 = vadd.f32 %v2694_v3, %v3437_v54 }
 0x2a3   :  { %v1114_v7 = vpop.f32.mrf.mxu0  ;;  %3980 = vst [vmem:[#allocation30_spill] sm:$0xff] %v3596_v38 }
 0x2a4   :  { %v3594_v52 = vpop.permute.xlu0 %704  ;;  %v1333_v38 = vmax.f32 %v1123_v42, 0.0  ;;  %v1115_v6 = vadd.f32 %v1114_v7, %v3459_v63 }
 0x2a5   :  { %v3570_v23 = vpop.f32.mrf.mxu0  ;;  %3979 = vst [vmem:[#allocation29_spill] sm:$0xff] %v3594_v52 }
 0x2a6   :  { %v630_v35 = vpop.permute.xlu1 %629  ;;  %v1421_v20 = vpack.c.bf16 %v1333_v38, %v1332_v50 }
 0x2a7   :  { %v3574_v28 = vpop.f32.mrf.mxu0 }
 0x2a8   :  { %3976 = vst [vmem:[#allocation26_spill] sm:$0xff] %v3574_v28  ;;  %v625_v44 = vpop.permute.xlu0 %624 }
 0x2a9   :  { %v3576_v29 = vpop.f32.mrf.mxu0 }
 0x2ab   :  { %v3580_v40 = vpop.f32.mrf.mxu0 }
 0x2ac   :  { %v3603_v33 = vpop.permute.xlu0 %694 }
 0x2ad   :  { %v3584_v46 = vpop.f32.mrf.mxu0 }
 0x2af   :  { %v3586_v57 = vpop.f32.mrf.mxu0 }
 0x2b0   :  { %v615_v34 = vpop.permute.xlu0 %614 }
 0x2b1   :  { %v2702_v19 = vpop.f32.mrf.mxu0 }
 0x2b2   :  { %v1155_v7 = vadd.f32 %v2702_v19, %v3501_v14 }
 0x2b3   :  { %v3592_v48 = vpop.f32.mrf.mxu0 }
 0x2b5   :  { %v2705_v27 = vpop.f32.mrf.mxu0 }
 0x2b7   :  { %v1159_v41 = vpop.f32.mrf.mxu0 }
 0x2b9   :  { %v2706_v2 = vpop.f32.mrf.mxu0 }
 0x2ba   :  { %v1171_v61 = vadd.f32 %v2706_v2, %v3465_v1  ;;  %v1331_v1 = vmax.f32 %v1115_v6, 0.0 }
 0x2bb   :  { %v1162_v39 = vpop.f32.mrf.mxu0 }
 0x2bc   :  { %v1345_v2 = vmax.f32 %v1171_v61, 0.0 }
 0x2bd   :  { %v2709_v36 = vpop.f32.mrf.mxu0 }
 0x2be   :  { %v1184_v31 = vadd.f32 %v2709_v36, %v3423_v49  ;;  %v3608_v49 = vpop.permute.xlu1 %699  ;;  %v1112_v36 = vadd.f32 %v1111_v56, %v3451_v60  ;;  %v1104_v60 = vadd.f32 %v3550_v43, %v3473_v4 }
 0x2bf   :  { %v1175_v37 = vpop.f32.mrf.mxu0 }
 0x2c0   :  { %v1176_v30 = vadd.f32 %v1175_v37, %v3445_v58  ;;  %v1348_v28 = vmax.f32 %v1184_v31, 0.0  ;;  %v1168_v58 = vadd.f32 %v2705_v27, %v3463_v0  ;;  %v1330_v0 = vmax.f32 %v1112_v36, 0.0 }
 0x2c1   :  { %v2710_v32 = vpop.f32.mrf.mxu0 }
 0x2c2   :  { %v1187_v52 = vadd.f32 %v2710_v32, %v3433_v53  ;;  %v1107_v32 = vadd.f32 %v2690_v16, %v3477_v5  ;;  %v1346_v37 = vmax.f32 %v1176_v30, 0.0  ;;  %v1344_v27 = vmax.f32 %v1168_v58, 0.0  ;;  %v620_v61 = vpop.permute.xlu1 %619 }
 0x2c3   :  { %v1178_v15 = vpop.f32.mrf.mxu0  ;;  %v1160_v30 = vadd.f32 %v1159_v41, %v3485_v8  ;;  %v1096_v8 = vadd.f32 %v3554_v47, %v3491_v10  ;;  %v1341_v58 = vmax.f32 %v1155_v7, 0.0 }
 0x2c4   :  { %v1349_v54 = vmax.f32 %v1187_v52, 0.0  ;;  %v1179_v3 = vadd.f32 %v1178_v15, %v3447_v59  ;;  %v1163_v52 = vadd.f32 %v1162_v39, %v3487_v9  ;;  %v1329_v5 = vmax.f32 %v1107_v32, 0.0 }
 0x2c5   :  { %v2713_v53 = vpop.f32.mrf.mxu0  ;;  %v1099_v9 = vadd.f32 %v3562_v51, %v3496_v12  ;;  %v1420_v39 = vpack.c.bf16 %v1331_v1, %v1330_v0  ;;  %v1342_v50 = vmax.f32 %v1160_v30, 0.0  ;;  %v1147_v32 = vadd.f32 %v3592_v48, %v3505_v18 }
 0x2c6   :  { %v1429_v42 = vpack.c.bf16 %v1349_v54, %v1348_v28  ;;  %v1347_v63 = vmax.f32 %v1179_v3, 0.0  ;;  %v1200_v15 = vadd.f32 %v2713_v53, %v625_v44  ;;  %v1427_v28 = vpack.c.bf16 %v1345_v2, %v1344_v27 }
 0x2c7   :  { %v1191_v31 = vpop.f32.mrf.mxu0  ;;  %v1343_v4 = vmax.f32 %v1163_v52, 0.0  ;;  %v1328_v3 = vmax.f32 %v1104_v60, 0.0  ;;  %v1327_v36 = vmax.f32 %v1099_v9, 0.0  ;;  %v1326_v47 = vmax.f32 %v1096_v8, 0.0  ;;  %v3982_v9 = vld [vmem:[#allocation21_spill] sm:$0xff] }
 0x2c8   :  { %v1428_v59 = vpack.c.bf16 %v1347_v63, %v1346_v37  ;;  %2498 = vmatprep.subr.bf16.mxu1 %v1429_v42  ;;  %v1192_v16 = vadd.f32 %v1191_v31, %v615_v34  ;;  %v1352_v43 = vmax.f32 %v1200_v15, 0.0  ;;  %v1144_v63 = vadd.f32 %v3586_v57, %v3503_v17  ;;  %v2848_v8 = vld [vmem:[%s3938_s6 + $0x20] ss:$16 sps:$4 sm:$0xff]  }
 0x2c9   :  { %v2714_v56 = vpop.f32.mrf.mxu0  ;;  %2499 = vmatpush3.bf16.msra.mxu1 %v1421_v20  ;;  %v1419_v19 = vpack.c.bf16 %v1329_v5, %v1328_v3  ;;  %v1426_v37 = vpack.c.bf16 %v1343_v4, %v1342_v50  ;;  %v1418_v2 = vpack.c.bf16 %v1327_v36, %v1326_v47  ;;  %v1139_v18 = vadd.f32 %v3576_v29, %v3509_v22  ;;  %v3984_v4 = vld [vmem:[#allocation18_spill] sm:$0xff] }
 0x2ca   :  { %v1203_v6 = vadd.f32 %v2714_v56, %v630_v35  ;;  %2500 = vmatprep.subr.bf16.mxu1 %v1428_v59  ;;  %v1152_v35 = vadd.f32 %v3584_v46, %v3499_v13  ;;  %v1350_v12 = vmax.f32 %v1192_v16, 0.0  ;;  %v1339_v52 = vmax.f32 %v1147_v32, 0.0 }
 0x2cb   :  { %v1194_v38 = vpop.f32.mrf.mxu0  ;;  %v1136_v34 = vadd.f32 %v3570_v23, %v3507_v21  ;;  %v1338_v17 = vmax.f32 %v1144_v63, 0.0  ;;  %v1337_v29 = vmax.f32 %v1139_v18, 0.0  ;;  %v1131_v0 = vadd.f32 %v3580_v40, %v3513_v26  ;;  %v3981_v23 = vld [vmem:[#allocation26_spill] sm:$0xff]  ;;  %v3987_v18 = vld [vmem:[#allocation7_spill] sm:$0xff] }
 0x2cc   :  { %v1353_v44 = vmax.f32 %v1203_v6, 0.0  ;;  %v1195_v54 = vadd.f32 %v1194_v38, %v620_v61  ;;  %v1340_v46 = vmax.f32 %v1152_v35, 0.0  ;;  %v1128_v5 = vadd.f32 %v3981_v23, %v3511_v25  ;;  %v2843_v25 = vld [vmem:[%s3938_s6] ss:$16 sps:$4 sm:$0xff]  }
 0x2cd   :  { %v2717_v41 = vpop.f32.mrf.mxu0  ;;  %2501 = vmatpush3.bf16.msra.mxu1 %v1420_v39  ;;  %v1424_v27 = vpack.c.bf16 %v1339_v52, %v1338_v17  ;;  %v1336_v21 = vmax.f32 %v1136_v34, 0.0  ;;  %v1335_v6 = vmax.f32 %v1131_v0, 0.0  ;;  %v3988_v52 = vld [vmem:[#allocation9_spill] sm:$0xff]  ;;  %v3990_v17 = vld [vmem:[#allocation12_spill] sm:$0xff]  ;;  %v3992_v23 = vld [vmem:[#allocation10_spill] sm:$0xff] }
 0x2ce   :  { %v3624_v51 = vpack.c.bf16 %v1353_v44, %v1352_v43  ;;  %v1351_v14 = vmax.f32 %v1195_v54, 0.0  ;;  %2502 = vmatprep.subr.bf16.mxu1 %v1427_v28  ;;  %v1216_v13 = vadd.f32 %v2717_v41, %v3568_v11  ;;  %v1425_v48 = vpack.c.bf16 %v1341_v58, %v1340_v46  ;;  %v3983_v28 = vld [vmem:[#allocation16_spill] sm:$0xff]  ;;  %v2846_v43 = vld [vmem:[%s3938_s6 + $0x24] ss:$16 sps:$4 sm:$0xff]  }
 0x2cf   :  { %v1207_v53 = vpop.f32.mrf.mxu0  ;;  %v1423_v16 = vpack.c.bf16 %v1337_v29, %v1336_v21  ;;  %v1334_v26 = vmax.f32 %v1128_v5, 0.0  ;;  %v2849_v41 = vld [vmem:[%s3938_s6 + $0x44] ss:$16 sps:$4 sm:$0xff]   ;;  %v3991_v29 = vld [vmem:[#allocation14_spill] sm:$0xff] }
 0x2d0   :  { %v3628_v10 = vpack.c.bf16 %v1351_v14, %v1350_v12  ;;  %v1208_v20 = vadd.f32 %v1207_v53, %v3588_v55  ;;  %v1356_v11 = vmax.f32 %v1216_v13, 0.0  ;;  %v2852_v58 = vld [vmem:[%s3938_s6 + $0x64] ss:$16 sps:$4 sm:$0xff]   ;;  %v2854_v13 = vld [vmem:[%s3938_s6 + $0x60] ss:$16 sps:$4 sm:$0xff]  }
 0x2d1   :  { %v2718_v42 = vpop.f32.mrf.mxu0  ;;  %2503 = vmatpush3.bf16.msra.mxu1 %v1419_v19  ;;  %v1422_v39 = vpack.c.bf16 %v1335_v6, %v1334_v26  ;;  %v2851_v19 = vld [vmem:[%s3938_s6 + $0x40] ss:$16 sps:$4 sm:$0xff]   ;;  %v2855_v46 = vld [vmem:[%s3938_s6 + $0x84] ss:$16 sps:$4 sm:$0xff]  }
 0x2d2   :  { %v1219_v1 = vadd.f32 %v2718_v42, %v3572_v24  ;;  %2504 = vmatprep.subr.bf16.mxu1 %v1426_v37  ;;  %v1354_v55 = vmax.f32 %v1208_v20, 0.0  ;;  %v3985_v42 = vld [vmem:[#allocation8_spill] sm:$0xff]  ;;  %v2858_v26 = vld [vmem:[%s3938_s6 + $0xa4] ss:$16 sps:$4 sm:$0xff]  }
 0x2d3   :  { %v1210_v31 = vpop.f32.mrf.mxu0 }
 0x2d4   :  { %v1357_v59 = vmax.f32 %v1219_v1, 0.0  ;;  %v1211_v15 = vadd.f32 %v1210_v31, %v3590_v62  ;;  %v3986_v1 = vld [vmem:[#allocation5_spill] sm:$0xff] }
 0x2d5   :  { %v3640_v57 = vpop.f32.mrf.mxu0  ;;  %2505 = vmatpush3.bf16.msra.mxu1 %v1418_v2 }
 0x2d6   :  { %v3642_v24 = vpack.c.bf16 %v1357_v59, %v1356_v11  ;;  %v1355_v60 = vmax.f32 %v1211_v15, 0.0  ;;  %2506 = vmatprep.subr.bf16.mxu1 %v1425_v48  ;;  %v3989_v59 = vld [vmem:[#allocation6_spill] sm:$0xff] }
 0x2d7   :  { %v3644_v22 = vpop.f32.mrf.mxu0 }
 0x2d8   :  { %v3648_v62 = vpack.c.bf16 %v1355_v60, %v1354_v55 }
 0x2d9   :  { %v3650_v56 = vpop.f32.mrf.mxu0  ;;  %2507 = vmatpush3.bf16.msra.mxu1 %v3552_v45 }
 0x2da   :  { %2508 = vmatprep.subr.bf16.mxu1 %v1424_v27 }
 0x2db   :  { %v3655_v30 = vpop.f32.mrf.mxu0 }
 0x2dd   :  { %v2725_v61 = vpop.f32.mrf.mxu0  ;;  %2509 = vmatpush3.bf16.msra.mxu1 %v3982_v9 }
 0x2de   :  { %2510 = vmatprep.subr.bf16.mxu1 %v1423_v16  ;;  %v1248_v48 = vadd.f32 %v2725_v61, %v3987_v18  ;;  %v2857_v16 = vld [vmem:[%s3938_s6 + $0x80] ss:$16 sps:$4 sm:$0xff]  }
 0x2df   :  { %v1239_v40 = vpop.f32.mrf.mxu0  ;;  %v3993_v61 = vld [vmem:[#allocation11_spill] sm:$0xff]  ;;  %v4000_v18 = vld [vmem:[#allocation25_spill] sm:$0xff] }
 0x2e0   :  { %v1364_v6 = vmax.f32 %v1248_v48, 0.0  ;;  %v1240_v9 = vadd.f32 %v1239_v40, %v3993_v61  ;;  %v3997_v40 = vld [vmem:[#allocation15_spill] sm:$0xff] }
 0x2e1   :  { %v2726_v7 = vpop.f32.mrf.mxu0  ;;  %2511 = vmatpush3.bf16.msra.mxu1 %v3983_v28 }
 0x2e2   :  { %2512 = vmatprep.subr.bf16.mxu1 %v1422_v39  ;;  %v1251_v63 = vadd.f32 %v2726_v7, %v3985_v42  ;;  %v3994_v39 = vld [vmem:[#allocation13_spill] sm:$0xff]  ;;  %v3998_v42 = vld [vmem:[#allocation19_spill] sm:$0xff] }
 0x2e3   :  { %v1242_v45 = vpop.f32.mrf.mxu0 }
 0x2e4   :  { %v1365_v34 = vmax.f32 %v1251_v63, 0.0  ;;  %v1243_v55 = vadd.f32 %v1242_v45, %v3990_v17 }
 0x2e5   :  { %v3662_v38 = vpop.f32.mrf.mxu0  ;;  %2513 = vmatpush3.bf16.msra.mxu1 %v3984_v4  ;;  %v3995_v4 = vld [vmem:[#allocation17_spill] sm:$0xff] }
 0x2e7   :  { %v3668_v44 = vpop.f32.mrf.mxu0 }
 0x2e8   :  { %1735 = vmatmul.mubr.bf16.vlgmr.msra.gmra.mxu1 %v2843_v25 }
 0x2e9   :  { %v3670_v54 = vpop.f32.mrf.mxu0  ;;  %1742 = vmatprep.mubr.bf16.mxu1 %v2846_v43  ;;  %v1235_v43 = vadd.f32 %v3650_v56, %v3995_v4  ;;  %v3999_v56 = vld [vmem:[#allocation23_spill] sm:$0xff] }
 0x2eb   :  { %v3672_v3 = vpop.f32.mrf.mxu0 }
 0x2ed   :  { %v3677_v35 = vpop.f32.mrf.mxu0 }
 0x2ef   :  { %v3682_v50 = vpop.f32.mrf.mxu0 }
 0x2f0   :  { %1743 = vmatmul.mubr.bf16.gmra.mxu1 %v2848_v8  ;;  %v1437_v8 = vpack.c.bf16 %v1365_v34, %v1364_v6 }
 0x2f1   :  { %v2734_v12 = vpop.f32.mrf.mxu0  ;;  %1750 = vmatprep.mubr.bf16.mxu1 %v2849_v41  ;;  %v1363_v41 = vmax.f32 %v1243_v55, 0.0 }
 0x2f3   :  { %v3684_v14 = vpop.f32.mrf.mxu0 }
 0x2f5   :  { %v2737_v36 = vpop.f32.mrf.mxu0 }
 0x2f6   :  { %v1296_v7 = vadd.f32 %v2737_v36, %v3994_v39 }
 0x2f7   :  { %v1287_v53 = vpop.f32.mrf.mxu0 }
 0x2f8   :  { %1751 = vmatmul.mubr.bf16.gmra.mxu1 %v2851_v19  ;;  %v1376_v36 = vmax.f32 %v1296_v7, 0.0  ;;  %v1288_v63 = vadd.f32 %v1287_v53, %v3998_v42  ;;  %v2861_v53 = vld [vmem:[%s3938_s6 + $0xc4] ss:$16 sps:$4 sm:$0xff]   ;;  %v2890_v42 = vld [vmem:[%s3938_s6 + $0xe8] ss:$16 sps:$4 sm:$0xff]  }
 0x2f9   :  { %v2738_v32 = vpop.f32.mrf.mxu0  ;;  %1758 = vmatprep.mubr.bf16.mxu1 %v2852_v58  ;;  %v3996_v58 = vld [vmem:[#allocation20_spill] sm:$0xff] }
 0x2fa   :  { %v1299_v0 = vadd.f32 %v2738_v32, %v3991_v29  ;;  %v1374_v34 = vmax.f32 %v1288_v63, 0.0 }
 0x2fb   :  { %v1290_v37 = vpop.f32.mrf.mxu0 }
 0x2fc   :  { %v1377_v19 = vmax.f32 %v1299_v0, 0.0  ;;  %v1291_v32 = vadd.f32 %v1290_v37, %v3996_v58  ;;  %v1283_v37 = vadd.f32 %v2734_v12, %v4000_v18  ;;  %v2879_v58 = vld [vmem:[%s3938_s6 + $0x8c] ss:$16 sps:$4 sm:$0xff]  }
 0x2fd   :  { %v2741_v47 = vpop.f32.mrf.mxu0 }
 0x2fe   :  { %v1312_v2 = vadd.f32 %v2741_v47, %v3986_v1  ;;  %v1232_v47 = vadd.f32 %v3640_v57, %v3997_v40  ;;  %v1227_v1 = vadd.f32 %v3655_v30, %v3999_v56  ;;  %v1443_v48 = vpack.c.bf16 %v1377_v19, %v1376_v36  ;;  %v2860_v57 = vld [vmem:[%s3938_s6 + $0xa0] ss:$16 sps:$4 sm:$0xff]   ;;  %v2878_v19 = vld [vmem:[%s3938_s6 + $0x68] ss:$16 sps:$4 sm:$0xff]   ;;  %v2888_v36 = vld [vmem:[%s3938_s6 + $0xec] ss:$16 sps:$4 sm:$0xff]  }
 0x2ff   :  { %v1303_v20 = vpop.f32.mrf.mxu0  ;;  %v1373_v55 = vmax.f32 %v1283_v37, 0.0  ;;  %v2884_v40 = vld [vmem:[%s3938_s6 + $0xa8] ss:$16 sps:$4 sm:$0xff]  }
 0x300   :  { %1759 = vmatmul.mubr.bf16.gmra.mxu1 %v2854_v13  ;;  %v1304_v11 = vadd.f32 %v1303_v20, %v3988_v52  ;;  %v1380_v27 = vmax.f32 %v1312_v2, 0.0  ;;  %v1361_v20 = vmax.f32 %v1235_v43, 0.0  ;;  %v1360_v52 = vmax.f32 %v1232_v47, 0.0  ;;  %v2885_v47 = vld [vmem:[%s3938_s6 + $0xcc] ss:$16 sps:$4 sm:$0xff]  }
 0x301   :  { %v2742_v31 = vpop.f32.mrf.mxu0  ;;  %1766 = vmatprep.mubr.bf16.mxu1 %v2855_v46  ;;  %v1362_v46 = vmax.f32 %v1240_v9, 0.0  ;;  %v1359_v17 = vmax.f32 %v1227_v1, 0.0  ;;  %v2864_v9 = vld [vmem:[%s3938_s6 + $0xe4] ss:$16 sps:$4 sm:$0xff]  }
 0x302   :  { %v1315_v15 = vadd.f32 %v2742_v31, %v3989_v59  ;;  %v1378_v28 = vmax.f32 %v1304_v11, 0.0  ;;  %v1375_v31 = vmax.f32 %v1291_v32, 0.0  ;;  %v4001_v11 = vld [vmem:[#allocation22_spill] sm:$0xff]  ;;  %v1435_v12 = vpack.c.bf16 %v1361_v20, %v1360_v52 }
 0x303   :  { %v1306_v60 = vpop.f32.mrf.mxu0  ;;  %v1436_v2 = vpack.c.bf16 %v1363_v41, %v1362_v46  ;;  %v1224_v59 = vadd.f32 %v3644_v22, %v4001_v11  ;;  %v2876_v41 = vld [vmem:[%s3938_s6 + $0x6c] ss:$16 sps:$4 sm:$0xff]   ;;  %v2881_v32 = vld [vmem:[%s3938_s6 + $0x88] ss:$16 sps:$4 sm:$0xff]  }
 0x304   :  { %v1381_v21 = vmax.f32 %v1315_v15, 0.0  ;;  %v1307_v5 = vadd.f32 %v1306_v60, %v3992_v23  ;;  %v4002_v15 = vld [vmem:[#allocation24_spill] sm:$0xff]  ;;  %v1442_v0 = vpack.c.bf16 %v1375_v31, %v1374_v34 }
 0x305   :  { %v1280_v30 = vadd.f32 %v3677_v35, %v4002_v15  ;;  %v4003_v60 = vld [vmem:[#allocation28_spill] sm:$0xff]  ;;  %v4005_v35 = vld [vmem:[#allocation30_spill] sm:$0xff] }
 0x306   :  { %v1445_v45 = vpack.c.bf16 %v1381_v21, %v1380_v27  ;;  %v1379_v25 = vmax.f32 %v1307_v5, 0.0  ;;  %v1275_v29 = vadd.f32 %v3684_v14, %v4003_v60  ;;  %v1358_v27 = vmax.f32 %v1224_v59, 0.0  ;;  %v4004_v21 = vld [vmem:[#allocation27_spill] sm:$0xff] }
 0x307   :  { %v1372_v22 = vmax.f32 %v1280_v30, 0.0  ;;  %v1272_v23 = vadd.f32 %v3682_v50, %v4004_v21  ;;  %v2863_v14 = vld [vmem:[%s3938_s6 + $0xc0] ss:$16 sps:$4 sm:$0xff]   ;;  %v2887_v46 = vld [vmem:[%s3938_s6 + $0xc8] ss:$16 sps:$4 sm:$0xff]  }
 0x308   :  { %v1444_v13 = vpack.c.bf16 %v1379_v25, %v1378_v28  ;;  %1767 = vmatmul.mubr.bf16.gmra.mxu1 %v2857_v16  ;;  %2562 = vmatprep.subr.bf16.mxu1 %v1445_v45  ;;  %v1434_v5 = vpack.c.bf16 %v1359_v17, %v1358_v27  ;;  %v1267_v16 = vadd.f32 %v3670_v54, %v4005_v35  ;;  %v1371_v61 = vmax.f32 %v1275_v29, 0.0  ;;  %v3819_v17 = vpop.permute.xlu0 %1534 }
 0x309   :  { %2563 = vmatpush3.bf16.msra.mxu1 %v1437_v8  ;;  %1774 = vmatprep.mubr.bf16.mxu1 %v2858_v26  ;;  %v1441_v6 = vpack.c.bf16 %v1373_v55, %v1372_v22  ;;  %v4006_v26 = vld [vmem:[#allocation29_spill] sm:$0xff]  ;;  %v1370_v50 = vmax.f32 %v1272_v23, 0.0  ;;  %v1259_v54 = vadd.f32 %v3672_v3, %v3608_v49  ;;  %v1256_v25 = vadd.f32 %v3668_v44, %v3603_v33  ;;  %v2869_v49 = vld [vmem:[%s3938_s6 + $0xc] ss:$16 sps:$4 sm:$0xff]  }
 0x30a   :  { %2564 = vmatprep.subr.bf16.mxu1 %v1444_v13  ;;  %v1264_v39 = vadd.f32 %v3662_v38, %v4006_v26  ;;  %v1369_v7 = vmax.f32 %v1267_v16, 0.0  ;;  %v2866_v38 = vld [vmem:[%s3938_s6 + $0xe0] ss:$16 sps:$4 sm:$0xff]   ;;  %v2867_v33 = vld [vmem:[%s3938_s6 + $0x8] ss:$16 sps:$4 sm:$0xff]   ;;  %v4007_v44 = vmov 0.0  }
 0x30b   :  { %v1440_v28 = vpack.c.bf16 %v1371_v61, %v1370_v50  ;;  %v1367_v43 = vmax.f32 %v1259_v54, 0.0  ;;  %v1366_v3 = vmax.f32 %v1256_v25, 0.0  ;;  %v2873_v8 = vld [vmem:[%s3938_s6 + $0x4c] ss:$16 sps:$4 sm:$0xff]  }
 0x30c   :  { %v1368_v45 = vmax.f32 %v1264_v39, 0.0  ;;  %v2882_v13 = vld [vmem:[%s3938_s6 + $0xac] ss:$16 sps:$4 sm:$0xff]   ;;  %v3825_v22 = vpop.permute.xlu0 %1524 }
 0x30d   :  { %2565 = vmatpush3.bf16.msra.mxu1 %v1436_v2 }
 0x30e   :  { %2566 = vmatprep.subr.bf16.mxu1 %v1443_v48  ;;  %v1439_v4 = vpack.c.bf16 %v1369_v7, %v1368_v45 }
 0x310   :  { %1775 = vmatmul.mubr.bf16.gmra.mxu1 %v2860_v57  ;;  %v3833_v61 = vpop.permute.xlu0 %1514 }
 0x311   :  { %2567 = vmatpush3.bf16.msra.mxu1 %v1435_v12  ;;  %1782 = vmatprep.mubr.bf16.mxu1 %v2861_v53 }
 0x312   :  { %2568 = vmatprep.subr.bf16.mxu1 %v1442_v0  ;;  %v3823_v0 = vpop.permute.xlu1 %1539 }
 0x314   :  { %v3842_v54 = vpop.permute.xlu0 %1504 }
 0x315   :  { %2569 = vmatpush3.bf16.msra.mxu1 %v1434_v5 }
 0x316   :  { %2570 = vmatprep.subr.bf16.mxu1 %v1441_v6  ;;  %v3829_v35 = vpop.permute.xlu1 %1529 }
 0x318   :  { %1783 = vmatmul.mubr.bf16.gmra.mxu1 %v2863_v14 }
 0x319   :  { %2571 = vmatpush3.bf16.msra.mxu1 %v3642_v24  ;;  %1790 = vmatprep.mubr.bf16.mxu1 %v2864_v9  ;;  %v1438_v24 = vpack.c.bf16 %v1367_v43, %v1366_v3  ;;  %v2891_v9 = vld [vmem:[%s3940_s8] sm:$0xff]  }
 0x31a   :  { %2572 = vmatprep.subr.bf16.mxu1 %v1440_v28  ;;  %2759 = vmatprep.mubr.bf16.mxu0 %v2891_v9  ;;  %v3840_v50 = vpop.permute.xlu1 %1519 }
 0x31d   :  { %2573 = vmatpush3.bf16.msra.mxu1 %v3648_v62  ;;  %v2870_v62 = vld [vmem:[%s3938_s6 + $0x2c] ss:$16 sps:$4 sm:$0xff]  }
 0x31e   :  { %2574 = vmatprep.subr.bf16.mxu1 %v1439_v4  ;;  %v3846_v4 = vpop.permute.xlu1 %1509 }
 0x320   :  { %1791 = vmatmul.mubr.bf16.gmra.mxu1 %v2866_v38 }
 0x321   :  { %2575 = vmatpush3.bf16.msra.mxu1 %v3624_v51  ;;  %1831 = vmatprep.mubr.bf16.mxu1 %v2869_v49  ;;  %v2872_v51 = vld [vmem:[%s3938_s6 + $0x28] ss:$16 sps:$4 sm:$0xff]   ;;  %v1495_v49 = vpop.permute.xlu0 %1494 }
 0x322   :  { %2576 = vmatprep.subr.bf16.mxu1 %v1438_v24 }
 0x325   :  { %2577 = vmatpush3.bf16.msra.mxu1 %v3628_v10  ;;  %v2875_v10 = vld [vmem:[%s3938_s6 + $0x48] ss:$16 sps:$4 sm:$0xff]  }
 0x326   :  { %2787 = vmatprep.subr.bf16.mxu1 %v4007_v44 }
 0x328   :  { %1832 = vmatmul.mubr.bf16.vlgmr.msra.gmra.mxu1 %v2867_v33 }
 0x329   :  { %1839 = vmatprep.mubr.bf16.mxu1 %v2870_v62  ;;  %v1500_v62 = vpop.permute.xlu1 %1499 }
 0x330   :  { %1840 = vmatmul.mubr.bf16.gmra.mxu1 %v2872_v51 }
 0x331   :  { %1847 = vmatprep.mubr.bf16.mxu1 %v2873_v8  ;;  %v1485_v8 = vpop.permute.xlu0 %1484 }
 0x338   :  { %1848 = vmatmul.mubr.bf16.gmra.mxu1 %v2875_v10 }
 0x339   :  { %1855 = vmatprep.mubr.bf16.mxu1 %v2876_v41 }
 0x340   :  { %1856 = vmatmul.mubr.bf16.gmra.mxu1 %v2878_v19 }
 0x341   :  { %1863 = vmatprep.mubr.bf16.mxu1 %v2879_v58  ;;  %v1490_v58 = vpop.permute.xlu1 %1489 }
 0x348   :  { %1864 = vmatmul.mubr.bf16.gmra.mxu1 %v2881_v32 }
 0x349   :  { %1871 = vmatprep.mubr.bf16.mxu1 %v2882_v13 }
 0x350   :  { %1872 = vmatmul.mubr.bf16.gmra.mxu1 %v2884_v40  ;;  %v1475_v40 = vpop.permute.xlu0 %1474 }
 0x351   :  { %1879 = vmatprep.mubr.bf16.mxu1 %v2885_v47 }
 0x358   :  { %1880 = vmatmul.mubr.bf16.gmra.mxu1 %v2887_v46 }
 0x359   :  { %1887 = vmatprep.mubr.bf16.mxu1 %v2888_v36  ;;  %v1480_v36 = vpop.permute.xlu1 %1479 }
 0x360   :  { %1888 = vmatmul.mubr.bf16.gmra.mxu1 %v2890_v42 }
 0x361   :  { %2789 = vmatprep.mubr.msk.bf16.mxu1 %vm2931_vm2, %v4007_v44 }
 0x3a8   :  { %v2514_v63 = vpop.f32.mrf.mxu1 }
 0x3aa   :  { %v2515_v20 = vpop.f32.mrf.mxu1 }
 0x3ab   :  { %v3807_v56 = vadd.f32 %v2515_v20, %v2514_v63  ;;  %v1465_v63 = vpop.permute.xlu0 %1464 }
 0x3ac   :  { %v2517_v1 = vpop.f32.mrf.mxu1 }
 0x3ae   :  { %v2518_v2 = vpop.f32.mrf.mxu1 }
 0x3af   :  { %v3809_v18 = vadd.f32 %v2518_v2, %v2517_v1  ;;  %v1737_v1 = vadd.f32 %v3807_v56, %v1465_v63 }
 0x3b0   :  { %v2520_v37 = vpop.f32.mrf.mxu1 }
 0x3b2   :  { %v2521_v48 = vpop.f32.mrf.mxu1 }
 0x3b3   :  { %v3811_v31 = vadd.f32 %v2521_v48, %v2520_v37 }
 0x3b4   :  { %v2523_v57 = vpop.f32.mrf.mxu1 }
 0x3b6   :  { %v2524_v52 = vpop.f32.mrf.mxu1 }
 0x3b7   :  { %v3813_v11 = vadd.f32 %v2524_v52, %v2523_v57  ;;  %v1470_v57 = vpop.permute.xlu1 %1469 }
 0x3b8   :  { %v2526_v59 = vpop.f32.mrf.mxu1 }
 0x3ba   :  { %v2527_v53 = vpop.f32.mrf.mxu1 }
 0x3bb   :  { %v3815_v15 = vadd.f32 %v2527_v53, %v2526_v59  ;;  %v1740_v59 = vadd.f32 %v3809_v18, %v1470_v57 }
 0x3bc   :  { %v2529_v30 = vpop.f32.mrf.mxu1 }
 0x3be   :  { %v2530_v34 = vpop.f32.mrf.mxu1 }
 0x3bf   :  { %v3817_v12 = vadd.f32 %v2530_v34, %v2529_v30 }
 0x3c0   :  { %v2532_v55 = vpop.f32.mrf.mxu1 }
 0x3c2   :  { %v2533_v60 = vpop.f32.mrf.mxu1 }
 0x3c3   :  { %v3821_v29 = vadd.f32 %v2533_v60, %v2532_v55  ;;  %v1745_v60 = vadd.f32 %v3811_v31, %v1475_v40  ;;  %v1756_v40 = vadd.f32 %v3817_v12, %v1490_v58 }
 0x3c4   :  { %v2535_v27 = vpop.f32.mrf.mxu1 }
 0x3c6   :  { %v2536_v21 = vpop.f32.mrf.mxu1 }
 0x3c7   :  { %v3827_v23 = vadd.f32 %v2536_v21, %v2535_v27 }
 0x3c8   :  { %v2538_v5 = vpop.f32.mrf.mxu1 }
 0x3c9   :  { %v1764_v57 = vadd.f32 %v3827_v23, %v1500_v62 }
 0x3ca   :  { %v2539_v16 = vpop.f32.mrf.mxu1 }
 0x3cb   :  { %v3831_v6 = vadd.f32 %v2539_v16, %v2538_v5 }
 0x3cc   :  { %v2541_v14 = vpop.f32.mrf.mxu1 }
 0x3ce   :  { %v2542_v26 = vpop.f32.mrf.mxu1 }
 0x3cf   :  { %v3838_v39 = vadd.f32 %v2542_v26, %v2541_v14  ;;  %v1748_v26 = vadd.f32 %v3813_v11, %v1480_v36 }
 0x3d0   :  { %v2544_v7 = vpop.f32.mrf.mxu1 }
 0x3d2   :  { %v2545_v28 = vpop.f32.mrf.mxu1 }
 0x3d3   :  { %v3844_v45 = vadd.f32 %v2545_v28, %v2544_v7 }
 0x3d4   :  { %v2547_v25 = vpop.f32.mrf.mxu1 }
 0x3d6   :  { %v2548_v43 = vpop.f32.mrf.mxu1 }
 0x3d7   :  { %v3848_v38 = vadd.f32 %v2548_v43, %v2547_v25  ;;  %v1753_v43 = vadd.f32 %v3815_v15, %v1485_v8  ;;  %v1761_v15 = vadd.f32 %v3821_v29, %v1495_v49  ;;  %v1772_v29 = vadd.f32 %v3838_v39, %v3846_v4 }
 0x3d8   :  { %v2550_v3 = vpop.f32.mrf.mxu1 }
 0x3da   :  { %v2551_v24 = vpop.f32.mrf.mxu1 }
 0x3db   :  { %v3850_v33 = vadd.f32 %v2551_v24, %v2550_v3 }
 0x3dc   :  { %v2553_v51 = vpop.f32.mrf.mxu1 }
 0x3de   :  { %v2554_v10 = vpop.f32.mrf.mxu1 }
 0x3df   :  { %v3852_v41 = vadd.f32 %v2554_v10, %v2553_v51 }
 0x3e0   :  { %v2556_v19 = vpop.f32.mrf.mxu1 }
 0x3e2   :  { %v2557_v32 = vpop.f32.mrf.mxu1 }
 0x3e3   :  { %v3854_v13 = vadd.f32 %v2557_v32, %v2556_v19 }
 0x3e4   :  { %v3856_v47 = vpop.f32.mrf.mxu1 }
 0x3e6   :  { %v3858_v46 = vpop.f32.mrf.mxu1 }
 0x3e8   :  { %v2578_v42 = vpop.f32.mrf.mxu1 }
 0x3ea   :  { %v2579_v20 = vpop.f32.mrf.mxu1 }
 0x3eb   :  { %v2580_v2 = vadd.f32 %v2579_v20, %v2578_v42 }
 0x3ec   :  { %v2581_v37 = vpop.f32.mrf.mxu1 }
 0x3ed   :  { %v1834_v48 = vadd.f32 %v2580_v2, %v1737_v1 }
 0x3ee   :  { %v2582_v52 = vpop.f32.mrf.mxu1 }
 0x3ef   :  { %v2583_v53 = vadd.f32 %v2582_v52, %v2581_v37  ;;  %v1896_v27 = vmax.f32 %v1834_v48, 0.0 }
 0x3f0   :  { %v2584_v30 = vpop.f32.mrf.mxu1 }
 0x3f1   :  { %v1837_v34 = vadd.f32 %v2583_v53, %v1740_v59 }
 0x3f2   :  { %v2585_v55 = vpop.f32.mrf.mxu1 }
 0x3f3   :  { %v1897_v21 = vmax.f32 %v1837_v34, 0.0  ;;  %v2586_v5 = vadd.f32 %v2585_v55, %v2584_v30 }
 0x3f4   :  { %v2587_v16 = vpop.f32.mrf.mxu1 }
 0x3f5   :  { %v1842_v14 = vadd.f32 %v2586_v5, %v1745_v60  ;;  %v3863_v9 = vpack.c.bf16 %v1897_v21, %v1896_v27  ;;  %v1769_v27 = vadd.f32 %v3831_v6, %v3842_v54  ;;  %v1780_v6 = vadd.f32 %v3848_v38, %v3840_v50 }
 0x3f6   :  { %v2588_v56 = vpop.f32.mrf.mxu1 }
 0x3f7   :  { %v2589_v7 = vadd.f32 %v2588_v56, %v2587_v16  ;;  %v1898_v3 = vmax.f32 %v1842_v14, 0.0 }
 0x3f8   :  { %v2590_v28 = vpop.f32.mrf.mxu1 }
 0x3f9   :  { %v1845_v25 = vadd.f32 %v2589_v7, %v1748_v26 }
 0x3fa   :  { %v2591_v18 = vpop.f32.mrf.mxu1 }
 0x3fb   :  { %v1899_v24 = vmax.f32 %v1845_v25, 0.0  ;;  %v2592_v51 = vadd.f32 %v2591_v18, %v2590_v28  ;;  %v1777_v25 = vadd.f32 %v3844_v45, %v3833_v61  ;;  %v1788_v61 = vadd.f32 %v3852_v41, %v3829_v35 }
 0x3fc   :  { %v2593_v31 = vpop.f32.mrf.mxu1 }
 0x3fd   :  { %v1850_v10 = vadd.f32 %v2592_v51, %v1753_v43  ;;  %v3867_v19 = vpack.c.bf16 %v1899_v24, %v1898_v3 }
 0x3fe   :  { %v2594_v32 = vpop.f32.mrf.mxu1 }
 0x3ff   :  { %v2595_v42 = vadd.f32 %v2594_v32, %v2593_v31  ;;  %v1900_v36 = vmax.f32 %v1850_v10, 0.0 }
 0x400   :  { %v2596_v63 = vpop.f32.mrf.mxu1 }
 0x401   :  { %v1853_v20 = vadd.f32 %v2595_v42, %v1756_v40  ;;  %v1785_v40 = vadd.f32 %v3850_v33, %v3825_v22  ;;  %v1793_v22 = vadd.f32 %v3854_v13, %v3819_v17  ;;  %v2892_v17 = vld [vmem:[%s3940_s8 + $0x8] sm:$0xff]   ;;  %v2894_v13 = vld [vmem:[%s3940_s8 + $0x18] sm:$0xff]  }
 0x402   :  { %v2597_v11 = vpop.f32.mrf.mxu1 }
 0x403   :  { %v1901_v1 = vmax.f32 %v1853_v20, 0.0  ;;  %v2598_v2 = vadd.f32 %v2597_v11, %v2596_v63 }
 0x404   :  { %v2599_v37 = vpop.f32.mrf.mxu1 }
 0x405   :  { %v3871_v8 = vpack.c.bf16 %v1901_v1, %v1900_v36  ;;  %v1858_v52 = vadd.f32 %v2598_v2, %v1761_v15  ;;  %v2561_v36 = vadd.f32 %v3858_v46, %v3856_v47  ;;  %v2895_v47 = vld [vmem:[%s3942_s10] sm:$0xff]   ;;  %v1974_v46 = vpop.permute.xlu1 %1973 }
 0x406   :  { %v2600_v48 = vpop.f32.mrf.mxu1 }
 0x407   :  { %v2601_v59 = vadd.f32 %v2600_v48, %v2599_v37  ;;  %v1902_v58 = vmax.f32 %v1858_v52, 0.0 }
 0x408   :  { %v2602_v53 = vpop.f32.mrf.mxu1 }
 0x409   :  { %v1861_v30 = vadd.f32 %v2601_v59, %v1764_v57  ;;  %v1796_v57 = vadd.f32 %v2561_v36, %v3823_v0  ;;  %v2893_v0 = vld [vmem:[%s3940_s8 + $0x10] sm:$0xff]  }
 0x40a   :  { %v2603_v12 = vpop.f32.mrf.mxu1 }
 0x40b   :  { %v1903_v34 = vmax.f32 %v1861_v30, 0.0  ;;  %v2604_v55 = vadd.f32 %v2603_v12, %v2602_v53 }
 0x40c   :  { %v2605_v60 = vpop.f32.mrf.mxu1 }
 0x40d   :  { %v1923_v21 = vpack.c.bf16 %v1903_v34, %v1902_v58  ;;  %v1866_v49 = vadd.f32 %v2604_v55, %v1769_v27  ;;  %v1964_v58 = vpop.permute.xlu1 %1963 }
 0x40e   :  { %v2606_v5 = vpop.f32.mrf.mxu1 }
 0x40f   :  { %v2607_v16 = vadd.f32 %v2606_v5, %v2605_v60  ;;  %v1904_v56 = vmax.f32 %v1866_v49, 0.0 }
 0x410   :  { %v2608_v23 = vpop.f32.mrf.mxu1 }
 0x411   :  { %v1869_v62 = vadd.f32 %v2607_v16, %v1772_v29  ;;  %v1954_v5 = vpop.permute.xlu1 %1953 }
 0x412   :  { %v2609_v14 = vpop.f32.mrf.mxu1 }
 0x413   :  { %v1905_v26 = vmax.f32 %v1869_v62, 0.0  ;;  %v2610_v7 = vadd.f32 %v2609_v14, %v2608_v23 }
 0x414   :  { %v2611_v28 = vpop.f32.mrf.mxu1 }
 0x415   :  { %v1924_v18 = vpack.c.bf16 %v1905_v26, %v1904_v56  ;;  %v1874_v54 = vadd.f32 %v2610_v7, %v1777_v25 }
 0x416   :  { %v2612_v43 = vpop.f32.mrf.mxu1 }
 0x417   :  { %v2613_v3 = vadd.f32 %v2612_v43, %v2611_v28  ;;  %v1906_v51 = vmax.f32 %v1874_v54, 0.0 }
 0x418   :  { %v2614_v39 = vpop.f32.mrf.mxu1 }
 0x419   :  { %v1877_v4 = vadd.f32 %v2613_v3, %v1780_v6  ;;  %v1944_v6 = vpop.permute.xlu1 %1943 }
 0x41a   :  { %v2615_v24 = vpop.f32.mrf.mxu1 }
 0x41b   :  { %v1907_v31 = vmax.f32 %v1877_v4, 0.0  ;;  %v2616_v10 = vadd.f32 %v2615_v24, %v2614_v39 }
 0x41c   :  { %v2617_v32 = vpop.f32.mrf.mxu1 }
 0x41d   :  { %v1925_v42 = vpack.c.bf16 %v1907_v31, %v1906_v51  ;;  %v1882_v45 = vadd.f32 %v2616_v10, %v1785_v40 }
 0x41e   :  { %v2618_v63 = vpop.f32.mrf.mxu1 }
 0x41f   :  { %v2619_v20 = vadd.f32 %v2618_v63, %v2617_v32  ;;  %v1908_v1 = vmax.f32 %v1882_v45, 0.0  ;;  %v2103_v63 = vpop.permute.xlu1 %2102 }
 0x420   :  { %v2620_v50 = vpop.f32.mrf.mxu1 }
 0x421   :  { %v1885_v38 = vadd.f32 %v2619_v20, %v1788_v61 }
 0x422   :  { %v2621_v11 = vpop.f32.mrf.mxu1 }
 0x423   :  { %v1909_v2 = vmax.f32 %v1885_v38, 0.0  ;;  %v2622_v37 = vadd.f32 %v2621_v11, %v2620_v50  ;;  %v2093_v11 = vpop.permute.xlu1 %2092 }
 0x424   :  { %v2623_v15 = vpop.f32.mrf.mxu1 }
 0x425   :  { %v1926_v33 = vpack.c.bf16 %v1909_v2, %v1908_v1  ;;  %v1890_v35 = vadd.f32 %v2622_v37, %v1793_v22 }
 0x426   :  { %v2624_v48 = vpop.f32.mrf.mxu1 }
 0x427   :  { %v2625_v41 = vadd.f32 %v2624_v48, %v2623_v15  ;;  %v1910_v59 = vmax.f32 %v1890_v35, 0.0 }
 0x429   :  { %v1893_v52 = vadd.f32 %v2625_v41, %v1796_v57 }
 0x42b   :  { %v1911_v53 = vmax.f32 %v1893_v52, 0.0  ;;  %v2175_v52 = vld [vmem:[%s3944_s12] sm:$0xf] }
 0x42d   :  { %v1927_v30 = vpack.c.bf16 %v1911_v53, %v1910_v59 }
 0x42f   :  { %2743 = vmatprep.subr.bf16.mxu0 %v1927_v30 }
 0x430   :  { %2744 = vmatpush3.bf16.msra.mxu0 %v1927_v30 }
 0x431   :  { %2745 = vmatprep.subr.bf16.mxu0 %v1926_v33 }
 0x434   :  { %2746 = vmatpush3.bf16.msra.mxu0 %v1926_v33 }
 0x435   :  { %2747 = vmatprep.subr.bf16.mxu0 %v1925_v42 }
 0x438   :  { %2748 = vmatpush3.bf16.msra.mxu0 %v1925_v42  ;;  %v2896_v42 = vld [vmem:[%s3942_s10 + $0x8] sm:$0xff]  }
 0x439   :  { %2749 = vmatprep.subr.bf16.mxu0 %v1924_v18 }
 0x43c   :  { %2750 = vmatpush3.bf16.msra.mxu0 %v1924_v18 }
 0x43d   :  { %2751 = vmatprep.subr.bf16.mxu0 %v1923_v21 }
 0x440   :  { %2752 = vmatpush3.bf16.msra.mxu0 %v1923_v21 }
 0x441   :  { %2753 = vmatprep.subr.bf16.mxu0 %v3871_v8 }
 0x444   :  { %2754 = vmatpush3.bf16.msra.mxu0 %v3871_v8 }
 0x445   :  { %2755 = vmatprep.subr.bf16.mxu0 %v3867_v19 }
 0x448   :  { %2756 = vmatpush3.bf16.msra.mxu0 %v3867_v19  ;;  %v1969_v19 = vpop.permute.xlu0 %1968 }
 0x449   :  { %2757 = vmatprep.subr.bf16.mxu0 %v3863_v9 }
 0x44c   :  { %2758 = vmatpush3.bf16.msra.mxu0 %v3863_v9  ;;  %v1959_v55 = vpop.permute.xlu0 %1958 }
 0x44f   :  { %2760 = vmatmul.mubr.bf16.vlgmr.msra.gmra.mxu0 %v2892_v17 }
 0x450   :  { %2763 = vmatprep.mubr.bf16.mxu0 %v2893_v0  ;;  %v1949_v23 = vpop.permute.xlu0 %1948 }
 0x454   :  { %v1939_v4 = vpop.permute.xlu0 %1938 }
 0x457   :  { %2764 = vmatmul.mubr.bf16.gmra.mxu0 %v2894_v13 }
 0x458   :  { %2775 = vmatprep.mubr.msk.bf16.mxu0 %vm2115_vm1, %v2895_v47  ;;  %v2098_v61 = vpop.permute.xlu0 %2097 }
 0x45c   :  { %v2088_v1 = vpop.permute.xlu0 %2087 }
 0x460   :  { %v2182_v59 = vpop.permute.xlu0 %2181 }
 0x50f   :  { %v2761_v9 = vpop.f32.mrf.mxu0 }
 0x510   :  { %v2043_v28 = vadd.f32 %v2761_v9, %v1949_v23 }
 0x511   :  { %v2034_v8 = vpop.f32.mrf.mxu0 }
 0x512   :  { %v2067_v24 = vmax.f32 %v2043_v28, 0.0  ;;  %v2035_v51 = vadd.f32 %v2034_v8, %v1939_v4 }
 0x513   :  { %v2762_v12 = vpop.f32.mrf.mxu0 }
 0x514   :  { %v2046_v14 = vadd.f32 %v2762_v12, %v1954_v5  ;;  %v2065_v32 = vmax.f32 %v2035_v51, 0.0 }
 0x515   :  { %v2037_v34 = vpop.f32.mrf.mxu0 }
 0x516   :  { %v2068_v54 = vmax.f32 %v2046_v14, 0.0  ;;  %v2038_v3 = vadd.f32 %v2037_v34, %v1944_v6 }
 0x517   :  { %v2765_v60 = vpop.f32.mrf.mxu0 }
 0x518   :  { %v2059_v21 = vadd.f32 %v2765_v60, %v1969_v19  ;;  %v2078_v31 = vpack.c.bf16 %v2068_v54, %v2067_v24  ;;  %v2066_v10 = vmax.f32 %v2038_v3, 0.0  ;;  %v2234_v19 = vpop.permute.xlu1 %2233 }
 0x519   :  { %v2050_v27 = vpop.f32.mrf.mxu0 }
 0x51a   :  { %v2051_v49 = vadd.f32 %v2050_v27, %v1959_v55  ;;  %v2071_v56 = vmax.f32 %v2059_v21, 0.0  ;;  %v2077_v40 = vpack.c.bf16 %v2066_v10, %v2065_v32 }
 0x51b   :  { %v2766_v29 = vpop.f32.mrf.mxu0 }
 0x51c   :  { %v2062_v16 = vadd.f32 %v2766_v29, %v1974_v46  ;;  %v2069_v25 = vmax.f32 %v2051_v49, 0.0 }
 0x51d   :  { %v2053_v62 = vpop.f32.mrf.mxu0 }
 0x51e   :  { %v2072_v26 = vmax.f32 %v2062_v16, 0.0  ;;  %v2054_v7 = vadd.f32 %v2053_v62, %v1964_v58  ;;  %v2292_v62 = vld [vmem:[%s3933_s1] sm:$0x1]  ;;  %s2909_s1 = scalar_lea.vmem %s2315_s24, 32 }
 0x51f   :  { %p2911_p2 = scmp.lt.s32.totalorder %s2909_s1, %s2905_s25 }
 0x520   :  { %v2080_v18 = vpack.c.bf16 %v2072_v26, %v2071_v56  ;;  %v2070_v43 = vmax.f32 %v2054_v7, 0.0 }
 0x521   :  { %p2912_p3 = por %p2911_p2, %p2910_p1 }
 0x522   :  { %v2079_v39 = vpack.c.bf16 %v2070_v43, %v2069_v25  ;;  %2767 = vmatprep.subr.bf16.mxu0 %v2080_v18 }
 0x523   :  { %2768 = vmatpush3.bf16.msra.mxu0 %v2080_v18  ;;  %p2913_p4 = pnand %p2912_p3, %p2906_p0 }
 0x524   :  { %2769 = vmatprep.subr.bf16.mxu0 %v2079_v39 }
 0x527   :  { %2770 = vmatpush3.bf16.msra.mxu0 %v2079_v39 }
 0x528   :  { %2771 = vmatprep.subr.bf16.mxu0 %v2078_v31 }
 0x52b   :  { %2772 = vmatpush3.bf16.msra.mxu0 %v2078_v31 }
 0x52c   :  { %2773 = vmatprep.subr.bf16.mxu0 %v2077_v40 }
 0x52f   :  { %2774 = vmatpush3.bf16.msra.mxu0 %v2077_v40 }
 0x530   :  { %2779 = vmatprep.subr.bf16.mxu0 %v4007_v44 }
 0x532   :  { %2776 = vmatmul.mubr.msk.bf16.vlgmr.msra.gmra.mxu0 %vm2115_vm1, %v2896_v42 }
 0x533   :  { %2783 = vmatprep.mubr.msk.bf16.mxu0 %vm2931_vm2, %v4007_v44 }
 0x5f2   :  { %v2777_v45 = vpop.f32.mrf.mxu0 }
 0x5f3   :  { %v2165_v50 = vadd.f32 %v2777_v45, %v2098_v61 }
 0x5f4   :  { %v2156_v20 = vpop.f32.mrf.mxu0 }
 0x5f5   :  { %v2173_v37 = vmax.f32 %v2165_v50, 0.0  ;;  %v2157_v15 = vadd.f32 %v2156_v20, %v2088_v1 }
 0x5f6   :  { %v2778_v38 = vpop.f32.mrf.mxu0 }
 0x5f7   :  { %v2168_v36 = vadd.f32 %v2778_v38, %v2103_v63  ;;  %v2171_v35 = vmax.f32 %v2157_v15, 0.0 }
 0x5f8   :  { %v2159_v2 = vpop.f32.mrf.mxu0 }
 0x5f9   :  { %v2174_v22 = vmax.f32 %v2168_v36, 0.0  ;;  %v2160_v33 = vadd.f32 %v2159_v2, %v2093_v11 }
 0x5fb   :  { %v2177_v48 = vpack.c.bf16 %v2174_v22, %v2173_v37  ;;  %v2172_v57 = vmax.f32 %v2160_v33, 0.0 }
 0x5fd   :  { %2780 = vmatpush3.bf16.msra.mxu0 %v2177_v48  ;;  %v2176_v41 = vpack.c.bf16 %v2172_v57, %v2171_v35 }
 0x5fe   :  { %2781 = vmatprep.subr.bf16.mxu0 %v4007_v44  ;;  %v2228_v44 = vld [vmem:[%s3946_s14] sm:$0x3] }
 0x601   :  { %2782 = vmatpush3.bf16.msra.mxu0 %v2176_v41 }
 0x604   :  { %2784 = vmatmul.mubr.msk.bf16.vlgmr.msra.gmra.mxu0 %vm932_vm15, %v2175_v52 }
 0x6c4   :  { %v2221_v53 = vpop.f32.mrf.mxu0 }
 0x6c5   :  { %v2222_v30 = vadd.f32 %v2221_v53, %v2182_v59 }
 0x6c6   :  { %v2785_v17 = vpop.f32.mrf.mxu0 }
 0x6c7   :  { %v2227_v0 = vmax.f32 %v2222_v30, 0.0 }
 0x6c8   :  { %v2224_v13 = vpop.f32.mrf.mxu0 }
 0x6c9   :  { %v2229_v47 = vpack.c.bf16 %v2227_v0, %v2227_v0 }
 0x6ca   :  { %v2786_v46 = vpop.f32.mrf.mxu0 }
 0x6cb   :  { %v2241_v9 = vsel %vm100_vm0, %v2229_v47, 0 }
 0x6cc   :  { %2788 = vmatpush3.bf16.msra.mxu1 %v2241_v9 }
 0x6cf   :  { %2790 = vmatmul.mubr.msk.bf16.vlgmr.msra.gmra.mxu1 %vm2236_vm3, %v2228_v44 }
 0x78f   :  { %v2277_v8 = vpop.f32.mrf.mxu1 }
 0x790   :  { %v2278_v12 = vadd.f32 %v2277_v8, %v2234_v19 }
 0x791   :  { %v2791_v58 = vpop.f32.mrf.mxu1 }
 0x792   :  { %v2284_v34 = vand.u32 2147483647, %v2278_v12  ;;  %v2283_v16 = vmax.f32 %v2278_v12, 0.0  ;;  %v2295_v56 = vrot.slane %v2278_v12, 2 }
 0x793   :  { %v2280_v55 = vpop.f32.mrf.mxu1 }
 0x794   :  { %v2285_v60 = vsub.f32 0.0, %v2284_v34 }
 0x795   :  { %v2792_v27 = vpop.f32.mrf.mxu1 }
 0x796   :  { %v2286_v21 = vmul.f32 1.442695, %v2285_v60 }
 0x798   :  { %2897 = vpow2.f32 %v2286_v21 }
 0x7a5   :  { %v2898_v5 = vpop.eup %2897 }
 0x7a6   :  { %v2288_v29 = vadd.f32 1.0, %v2898_v5 }
 0x7a8   :  { %2899 = vlog2.f32 %v2288_v29 }
 0x7b5   :  { %v2900_v49 = vpop.eup %2899 }
 0x7b6   :  { %v2290_v23 = vmul.f32 0.6931472, %v2900_v49 }
 0x7b8   :  { %v2291_v14 = vadd.f32 %v2290_v23, %v2283_v16 }
 0x7ba   :  { %v2293_v26 = vmul.f32 %v2292_v62, %v2291_v14 }
 0x7bc   :  { %v2297_v7 = vadd.f32 %v2295_v56, %v2293_v26 }
 0x7be   :  { %v2298_v28 = vsub.f32 0.0, %v2297_v7 }
 0x7c0   :  { %v2299_v25 = vmul.f32 1.442695, %v2298_v28 }
 0x7c2   :  { %2901 = vpow2.f32 %v2299_v25 }
 0x7cf   :  { %v2902_v18 = vpop.eup %2901 }
 0x7d0   :  { %v2301_v43 = vadd.f32 1.0, %v2902_v18 }
 0x7d2   :  { %2903 = vrcp.f32 %v2301_v43 }
 0x7df   :  { %v2904_v6 = vpop.eup %2903 }
 0x7e0   :  { %v2304_v54 = vrot.slane %v2904_v6, 7 }
 0x7e2   :  { %v2306_v3 = vmul.f32 %v2304_v54, %v2291_v14 }
 0x7e4   :  { %2307 = vst [vmem:[#allocation2 - $0x1] sm:$0x2] %v2306_v3 }
 0x7e5   :  { %2916 = shalt.err (!%p2913_p4)
}
 0x7e6   :  { %2317 = dma.vmem_to_hbm [thread:$0]  %s2315_s24, 16, %s3948_s16, [#allocation3]  }
 0x7e7   :  { %2925 = dma.done.wait [#allocation3], 16  }
 0x7e8   :  { %2926 = vsyncadd [#allocation3], 4294967280 }
 0x7e9   :  { %2321 = vsyncpa [#allocation3], 1 }

</bundles_post_ra>
